<compile_context>
chip_gen: v7x
topology: tpu7x:2x2x1
jax: 0.10.0
libtpu: 0.0.40
codegen_flags: <defaults>
</compile_context>

<pallas_src>
import jax
import jax.numpy as jnp
from jax.experimental import pallas as pl
from jax.experimental.pallas import tpu as pltpu

EPS = 1e-5


def projection_mlp_kernel(x_ref, w1_ref, gamma_ref, beta_ref, w2_ref,
                          out_ref, acc_ref):
    # grid = (num_out_tiles, num_hidden_tiles); axis 1 is the hidden reduction.
    k = pl.program_id(1)

    @pl.when(k == 0)
    def _():
        acc_ref[...] = jnp.zeros_like(acc_ref)

    # Linear 1 tile on the MXU: bf16 x bf16 -> f32 accumulation.
    h = jnp.dot(x_ref[...], w1_ref[...], preferred_element_type=jnp.float32)

    # gamma/beta are fully resident, one row per hidden tile.
    gamma = gamma_ref[pl.ds(k, 1), :]          # (1, tile_h) f32
    beta = beta_ref[pl.ds(k, 1), :]            # (1, tile_h) f32

    # BatchNorm1d(hidden) in training mode, per hidden feature.  The full batch
    # is resident so per-tile statistics == full BN1 statistics for these
    # features.  Folded into one scale/shift FMA; rsqrt goes to the EUP.
    mu1 = jnp.mean(h, axis=0, keepdims=True)
    var1 = jnp.mean(jnp.square(h - mu1), axis=0, keepdims=True)
    scale1 = gamma * jax.lax.rsqrt(var1 + EPS)
    shift1 = beta - mu1 * scale1
    h = jnp.maximum(h * scale1 + shift1, 0.0)

    # Linear 2 tile: accumulate the hidden reduction into a resident f32 scratch.
    acc_ref[...] += jnp.dot(h.astype(w2_ref.dtype), w2_ref[...],
                            preferred_element_type=jnp.float32)

    # Finalize: BatchNorm1d(out_dim, affine=False) on this output-feature tile
    # (per output feature over the full resident batch -> self-contained).
    @pl.when(k == pl.num_programs(1) - 1)
    def _():
        y = acc_ref[...]
        mu2 = jnp.mean(y, axis=0, keepdims=True)
        var2 = jnp.mean(jnp.square(y - mu2), axis=0, keepdims=True)
        out_ref[...] = ((y - mu2) * jax.lax.rsqrt(var2 + EPS)).astype(out_ref.dtype)


def _pick_tile(dim):
    # Prefer 512/256-wide tiles (fills the 256-wide MXU on v6e/v7x and
    # amortizes per-step pipeline overhead); fall back to the full dimension.
    for t in (512, 256, 128):
        if dim % t == 0:
            return t
    return dim  # block == full array dim is always legal


def projection_mlp(x, w1_t, gamma, beta, w2_t, *, tile_h=None, num_out_tiles=1,
                   out_dtype=jnp.float32, single_buffer_x=True):
    """x: (N, in_dim); w1_t: (in_dim, hidden); gamma/beta: (hidden,) or (1, hidden);
    w2_t: (hidden, out_dim).  Returns (N, out_dim) in `out_dtype`."""
    n, in_dim = x.shape
    hidden = w1_t.shape[1]
    out_dim = w2_t.shape[1]
    assert w1_t.shape == (in_dim, hidden) and w2_t.shape == (hidden, out_dim)

    tile_h = tile_h or _pick_tile(hidden)
    assert hidden % tile_h == 0
    num_h_tiles = hidden // tile_h

    assert out_dim % num_out_tiles == 0
    tile_o = out_dim // num_out_tiles
    assert tile_o % 128 == 0, "output tile must stay lane-dense (multiple of 128)"
    # BN statistics are taken over the full batch: every block spans all n rows.
    # (If the batch is ever tiled, switch to two-pass sum/sum-of-squares stats.)

    # Cast MXU operands to bf16 once, outside the kernel; BN params stay f32.
    x_bf = x.astype(jnp.bfloat16)
    w1_bf = w1_t.astype(jnp.bfloat16)
    w2_bf = w2_t.astype(jnp.bfloat16)
    gamma2d = jnp.asarray(gamma, jnp.float32).reshape(num_h_tiles, tile_h)
    beta2d = jnp.asarray(beta, jnp.float32).reshape(num_h_tiles, tile_h)

    out_size = jnp.dtype(out_dtype).itemsize
    grid = (num_out_tiles, num_h_tiles)

    # Accurate advisory cost estimate (matmul1 is recomputed once per out tile).
    flops = 2 * n * in_dim * hidden * num_out_tiles + 2 * n * hidden * out_dim
    bytes_accessed = (x_bf.size * 2
                      + w1_bf.size * 2 * num_out_tiles
                      + w2_bf.size * 2
                      + gamma2d.size * 4 + beta2d.size * 4
                      + n * out_dim * out_size)
    cost = pl.CostEstimate(flops=flops,
                           transcendentals=hidden * num_out_tiles + out_dim,
                           bytes_accessed=bytes_accessed)

    def est_vmem(x_bufs):
        return (x_bufs * n * in_dim * 2            # resident x (bf16)
                + 2 * in_dim * tile_h * 2          # W1 tile, double buffered
                + 2 * tile_h * tile_o * 2          # W2 tile, double buffered
                + 2 * 2 * hidden * 4               # resident gamma + beta
                + 2 * n * tile_o * out_size        # output block buffers
                + n * tile_o * 4)                  # f32 accumulator scratch

    def build_and_run(use_single_buffer_x):
        x_kwargs = {}
        if use_single_buffer_x:
            # Block index never changes -> one buffer is enough; saves n*in_dim*2B.
            x_kwargs = dict(pipeline_mode=pl.Buffered(1))
        vmem_need = est_vmem(1 if use_single_buffer_x else 2)
        # Floor 32 MiB (v5e/v6e scoped default is too small), cap 48 MiB (v7x
        # has only 64 MiB physical VMEM and needs compiler headroom).
        vmem_limit = int(max(32 << 20, min(vmem_need + (4 << 20), 48 << 20)))

        grid_spec = pltpu.PrefetchScalarGridSpec(
            num_scalar_prefetch=0,
            grid=grid,
            in_specs=[
                pl.BlockSpec((n, in_dim), lambda j, k: (0, 0), **x_kwargs),  # x
                pl.BlockSpec((in_dim, tile_h), lambda j, k: (0, k)),   # W1 col tile
                pl.BlockSpec((num_h_tiles, tile_h), lambda j, k: (0, 0)),  # gamma
                pl.BlockSpec((num_h_tiles, tile_h), lambda j, k: (0, 0)),  # beta
                pl.BlockSpec((tile_h, tile_o), lambda j, k: (k, j)),   # W2 row tile
            ],
            out_specs=pl.BlockSpec((n, tile_o), lambda j, k: (0, j)),  # lane-dense
            scratch_shapes=[pltpu.VMEM((n, tile_o), jnp.float32)],     # y accum
        )
        return pl.pallas_call(
            projection_mlp_kernel,
            out_shape=jax.ShapeDtypeStruct((n, out_dim), out_dtype),
            grid_spec=grid_spec,
            compiler_params=pltpu.CompilerParams(
                dimension_semantics=("parallel", "arbitrary"),
                vmem_limit_bytes=vmem_limit),
            cost_estimate=cost,
        )(x_bf, w1_bf, gamma2d, beta2d, w2_bf)

    if single_buffer_x:
        try:
            return build_and_run(True)
        except Exception:
            # pipeline_mode=pl.Buffered(1) not supported by this jax build;
            # fall back to the default double-buffered resident x.
            pass
    return build_and_run(False)


def reference(x, w1_t, gamma, beta, w2_t):
    # Same precision policy as the kernel: bf16 MXU operands, f32 accumulation.
    h = jnp.dot(x.astype(jnp.bfloat16), w1_t.astype(jnp.bfloat16),
                preferred_element_type=jnp.float32)
    mu1 = h.mean(0, keepdims=True)
    var1 = ((h - mu1) ** 2).mean(0, keepdims=True)
    h = (h - mu1) * jax.lax.rsqrt(var1 + EPS) * gamma + beta
    h = jnp.maximum(h, 0.0)
    y = jnp.dot(h.astype(jnp.bfloat16), w2_t.astype(jnp.bfloat16),
                preferred_element_type=jnp.float32)
    mu2 = y.mean(0, keepdims=True)
    var2 = ((y - mu2) ** 2).mean(0, keepdims=True)
    return (y - mu2) * jax.lax.rsqrt(var2 + EPS)


if __name__ == "__main__":
    # Small TPU-friendly shapes.  hidden=512 with tile_h=256 exercises the
    # hidden-reduction axis; out_dim=256 stays lane-dense.
    batch, in_dim, hidden_dim, out_dim = 64, 128, 512, 256

    key = jax.random.PRNGKey(0)
    kx, kw1, kw2 = jax.random.split(key, 3)

    x = jax.random.normal(kx, (batch, in_dim), dtype=jnp.float32)

    # Deterministic parameter init (Kaiming-uniform-like bound, as in nn.Linear).
    bound1 = 1.0 / (in_dim ** 0.5)
    bound2 = 1.0 / (hidden_dim ** 0.5)
    w1_t = jax.random.uniform(kw1, (in_dim, hidden_dim), jnp.float32,
                              minval=-bound1, maxval=bound1)
    w2_t = jax.random.uniform(kw2, (hidden_dim, out_dim), jnp.float32,
                              minval=-bound2, maxval=bound2)
    gamma = jnp.ones((hidden_dim,), jnp.float32)   # BatchNorm1d default weight
    beta = jnp.zeros((hidden_dim,), jnp.float32)   # BatchNorm1d default bias

    ref = reference(x, w1_t, gamma, beta, w2_t)

    # Default config: single output tile (no W1 re-fetch, no matmul1 recompute),
    # two hidden-reduction steps.
    out = projection_mlp(x, w1_t, gamma, beta, w2_t, tile_h=256)
    jax.block_until_ready(out)
    assert out.shape == (batch, out_dim)
    assert jnp.allclose(out, ref, atol=5e-3, rtol=5e-3), \
        float(jnp.max(jnp.abs(out - ref)))

    # v7x-style config: 2-way "parallel" output axis (keeps both TensorCores
    # busy at the cost of a 2x matmul1 recompute).  Must match the reference too.
    out2 = projection_mlp(x, w1_t, gamma, beta, w2_t, tile_h=256, num_out_tiles=2)
    jax.block_until_ready(out2)
    assert jnp.allclose(out2, ref, atol=5e-3, rtol=5e-3), \
        float(jnp.max(jnp.abs(out2 - ref)))

    print("KERNEL_OK")
</pallas_src>

<mosaic_0001>
module attributes {stable_mosaic.version = 11 : i64} {
  func.func @projection_mlp_kernel(%arg0: i32, %arg1: i32, %arg2: memref<64x128xbf16, #tpu.memory_space<vmem>>, %arg3: memref<128x256xbf16, #tpu.memory_space<vmem>>, %arg4: memref<2x256xf32, #tpu.memory_space<vmem>>, %arg5: memref<2x256xf32, #tpu.memory_space<vmem>>, %arg6: memref<256x256xbf16, #tpu.memory_space<vmem>>, %arg7: memref<64x256xf32, #tpu.memory_space<vmem>>, %arg8: memref<64x256xf32, #tpu.memory_space<vmem>>) attributes {dimension_semantics = [#tpu.dimension_semantics<parallel>, #tpu.dimension_semantics<arbitrary>], iteration_bounds = array<i64: 1, 2>, scalar_prefetch = 0 : i64, scratch_operands = 1 : i64, tpu.core_type = #tpu.core_type<tc>, window_params = [{pipeline_mode = #tpu.pipeline_mode<synchronous>, transform_indices = @transform_0, window_bounds = array<i64: 64, 128>}, {transform_indices = @transform_1, window_bounds = array<i64: 128, 256>}, {pipeline_mode = #tpu.pipeline_mode<synchronous>, transform_indices = @transform_2, window_bounds = array<i64: 2, 256>}, {pipeline_mode = #tpu.pipeline_mode<synchronous>, transform_indices = @transform_3, window_bounds = array<i64: 2, 256>}, {transform_indices = @transform_4, window_bounds = array<i64: 256, 256>}, {transform_indices = @transform_5, window_bounds = array<i64: 64, 256>}]} {
    %c0_i32 = arith.constant 0 : i32
    %0 = arith.cmpi eq, %arg1, %c0_i32 : i32
    %1 = arith.extui %0 : i1 to i32
    %c0_i32_0 = arith.constant 0 : i32
    %2 = arith.cmpi ne, %1, %c0_i32_0 : i32
    scf.if %2 {
      %cst_20 = arith.constant 0.000000e+00 : f32
      %42 = vector.broadcast %cst_20 : f32 to vector<64x256xf32>
      %c0_21 = arith.constant 0 : index
      %c0_22 = arith.constant 0 : index
      %43 = vector.load %arg8[%c0_21, %c0_22] : memref<64x256xf32, #tpu.memory_space<vmem>>, vector<64x256xf32>
      tpu.vector_store %arg8[%c0_21, %c0_22], %42 {strides = array<i32>} : memref<64x256xf32, #tpu.memory_space<vmem>>, vector<64x256xf32>,
    } else {
    }
    %c0 = arith.constant 0 : index
    %c0_1 = arith.constant 0 : index
    %3 = vector.load %arg2[%c0, %c0_1] : memref<64x128xbf16, #tpu.memory_space<vmem>>, vector<64x128xbf16>
    %c0_2 = arith.constant 0 : index
    %c0_3 = arith.constant 0 : index
    %4 = vector.load %arg3[%c0_2, %c0_3] : memref<128x256xbf16, #tpu.memory_space<vmem>>, vector<128x256xbf16>
    %cst = arith.constant dense<0.000000e+00> : vector<64x256xf32>
    %5 = tpu.matmul %3, %4, %cst {dimension_numbers = #tpu.dot_dimension_numbers<[1], [0], [0], [1], [0, 0, 1, 1], [], []>} : vector<64x128xbf16>, vector<128x256xbf16>, vector<64x256xf32> -> vector<64x256xf32>
    %6 = arith.index_cast %arg1 : i32 to index
    %c0_4 = arith.constant 0 : index
    %7 = vector.load %arg4[%6, %c0_4] : memref<2x256xf32, #tpu.memory_space<vmem>>, vector<1x256xf32>
    %8 = arith.index_cast %arg1 : i32 to index
    %c0_5 = arith.constant 0 : index
    %9 = vector.load %arg5[%8, %c0_5] : memref<2x256xf32, #tpu.memory_space<vmem>>, vector<1x256xf32>
    %cst_6 = arith.constant dense<0.000000e+00> : vector<256xf32>
    %10 = vector.multi_reduction <add>, %5, %cst_6 [0] : vector<64x256xf32> to vector<256xf32>
    %11 = vector.shape_cast %10 : vector<256xf32> to vector<1x256xf32>
    %cst_7 = arith.constant 6.400000e+01 : f32
    %12 = vector.broadcast %cst_7 : f32 to vector<1x256xf32>
    %13 = arith.divf %11, %12 : vector<1x256xf32>
    %14 = vector.broadcast %13 : vector<1x256xf32> to vector<64x256xf32>
    %15 = arith.subf %5, %14 : vector<64x256xf32>
    %16 = arith.mulf %15, %15 : vector<64x256xf32>
    %cst_8 = arith.constant dense<0.000000e+00> : vector<256xf32>
    %17 = vector.multi_reduction <add>, %16, %cst_8 [0] : vector<64x256xf32> to vector<256xf32>
    %18 = vector.shape_cast %17 : vector<256xf32> to vector<1x256xf32>
    %cst_9 = arith.constant 6.400000e+01 : f32
    %19 = vector.broadcast %cst_9 : f32 to vector<1x256xf32>
    %20 = arith.divf %18, %19 : vector<1x256xf32>
    %cst_10 = arith.constant 9.99999974E-6 : f32
    %21 = vector.broadcast %cst_10 : f32 to vector<1x256xf32>
    %22 = arith.addf %20, %21 : vector<1x256xf32>
    %23 = math.rsqrt %22 : vector<1x256xf32>
    %24 = arith.mulf %7, %23 : vector<1x256xf32>
    %25 = arith.mulf %13, %24 : vector<1x256xf32>
    %26 = arith.subf %9, %25 : vector<1x256xf32>
    %27 = vector.broadcast %24 : vector<1x256xf32> to vector<64x256xf32>
    %28 = arith.mulf %5, %27 : vector<64x256xf32>
    %29 = vector.broadcast %26 : vector<1x256xf32> to vector<64x256xf32>
    %30 = arith.addf %28, %29 : vector<64x256xf32>
    %cst_11 = arith.constant 0.000000e+00 : f32
    %31 = vector.broadcast %cst_11 : f32 to vector<64x256xf32>
    %32 = arith.maximumf %30, %31 : vector<64x256xf32>
    %c0_12 = arith.constant 0 : index
    %c0_13 = arith.constant 0 : index
    %33 = vector.load %arg8[%c0_12, %c0_13] : memref<64x256xf32, #tpu.memory_space<vmem>>, vector<64x256xf32>
    %34 = arith.truncf %32 : vector<64x256xf32> to vector<64x256xbf16>
    %c0_14 = arith.constant 0 : index
    %c0_15 = arith.constant 0 : index
    %35 = vector.load %arg6[%c0_14, %c0_15] : memref<256x256xbf16, #tpu.memory_space<vmem>>, vector<256x256xbf16>
    %cst_16 = arith.constant dense<0.000000e+00> : vector<64x256xf32>
    %36 = tpu.matmul %34, %35, %cst_16 {dimension_numbers = #tpu.dot_dimension_numbers<[1], [0], [0], [1], [0, 0, 1, 1], [], []>} : vector<64x256xbf16>, vector<256x256xbf16>, vector<64x256xf32> -> vector<64x256xf32>
    %37 = arith.addf %33, %36 : vector<64x256xf32>
    %c0_17 = arith.constant 0 : index
    %c0_18 = arith.constant 0 : index
    %38 = vector.load %arg8[%c0_17, %c0_18] : memref<64x256xf32, #tpu.memory_space<vmem>>, vector<64x256xf32>
    tpu.vector_store %arg8[%c0_17, %c0_18], %37 {strides = array<i32>} : memref<64x256xf32, #tpu.memory_space<vmem>>, vector<64x256xf32>,
    %c1_i32 = arith.constant 1 : i32
    %39 = arith.cmpi eq, %arg1, %c1_i32 : i32
    %40 = arith.extui %39 : i1 to i32
    %c0_i32_19 = arith.constant 0 : i32
    %41 = arith.cmpi ne, %40, %c0_i32_19 : i32
    scf.if %41 {
      %c0_20 = arith.constant 0 : index
      %c0_21 = arith.constant 0 : index
      %42 = vector.load %arg8[%c0_20, %c0_21] : memref<64x256xf32, #tpu.memory_space<vmem>>, vector<64x256xf32>
      %cst_22 = arith.constant dense<0.000000e+00> : vector<256xf32>
      %43 = vector.multi_reduction <add>, %42, %cst_22 [0] : vector<64x256xf32> to vector<256xf32>
      %44 = vector.shape_cast %43 : vector<256xf32> to vector<1x256xf32>
      %cst_23 = arith.constant 6.400000e+01 : f32
      %45 = vector.broadcast %cst_23 : f32 to vector<1x256xf32>
      %46 = arith.divf %44, %45 : vector<1x256xf32>
      %47 = vector.broadcast %46 : vector<1x256xf32> to vector<64x256xf32>
      %48 = arith.subf %42, %47 : vector<64x256xf32>
      %49 = arith.mulf %48, %48 : vector<64x256xf32>
      %cst_24 = arith.constant dense<0.000000e+00> : vector<256xf32>
      %50 = vector.multi_reduction <add>, %49, %cst_24 [0] : vector<64x256xf32> to vector<256xf32>
      %51 = vector.shape_cast %50 : vector<256xf32> to vector<1x256xf32>
      %cst_25 = arith.constant 6.400000e+01 : f32
      %52 = vector.broadcast %cst_25 : f32 to vector<1x256xf32>
      %53 = arith.divf %51, %52 : vector<1x256xf32>
      %54 = vector.broadcast %46 : vector<1x256xf32> to vector<64x256xf32>
      %55 = arith.subf %42, %54 : vector<64x256xf32>
      %cst_26 = arith.constant 9.99999974E-6 : f32
      %56 = vector.broadcast %cst_26 : f32 to vector<1x256xf32>
      %57 = arith.addf %53, %56 : vector<1x256xf32>
      %58 = math.rsqrt %57 : vector<1x256xf32>
      %59 = vector.broadcast %58 : vector<1x256xf32> to vector<64x256xf32>
      %60 = arith.mulf %55, %59 : vector<64x256xf32>
      %c0_27 = arith.constant 0 : index
      %c0_28 = arith.constant 0 : index
      %61 = vector.load %arg7[%c0_27, %c0_28] : memref<64x256xf32, #tpu.memory_space<vmem>>, vector<64x256xf32>
      tpu.vector_store %arg7[%c0_27, %c0_28], %60 {strides = array<i32>} : memref<64x256xf32, #tpu.memory_space<vmem>>, vector<64x256xf32>,
    } else {
    }
    return
  }
  func.func @transform_0(%arg0: i32, %arg1: i32) -> (i32, i32) {
    %c0_i32 = arith.constant 0 : i32
    %c0_i32_0 = arith.constant 0 : i32
    %c0_i32_1 = arith.constant 0 : i32
    return %c0_i32, %c0_i32_0 : i32, i32
  }
  func.func @transform_1(%arg0: i32, %arg1: i32) -> (i32, i32) {
    %c0_i32 = arith.constant 0 : i32
    %c0_i32_0 = arith.constant 0 : i32
    return %c0_i32, %arg1 : i32, i32
  }
  func.func @transform_2(%arg0: i32, %arg1: i32) -> (i32, i32) {
    %c0_i32 = arith.constant 0 : i32
    %c0_i32_0 = arith.constant 0 : i32
    %c0_i32_1 = arith.constant 0 : i32
    return %c0_i32, %c0_i32_0 : i32, i32
  }
  func.func @transform_3(%arg0: i32, %arg1: i32) -> (i32, i32) {
    %c0_i32 = arith.constant 0 : i32
    %c0_i32_0 = arith.constant 0 : i32
    %c0_i32_1 = arith.constant 0 : i32
    return %c0_i32, %c0_i32_0 : i32, i32
  }
  func.func @transform_4(%arg0: i32, %arg1: i32) -> (i32, i32) {
    %c0_i32 = arith.constant 0 : i32
    return %arg1, %arg0 : i32, i32
  }
  func.func @transform_5(%arg0: i32, %arg1: i32) -> (i32, i32) {
    %c0_i32 = arith.constant 0 : i32
    %c0_i32_0 = arith.constant 0 : i32
    return %c0_i32, %arg0 : i32, i32
  }
}

module attributes {stable_mosaic.version = 11 : i64} {
  func.func @projection_mlp_kernel(%arg0: i32, %arg1: i32, %arg2: memref<64x128xbf16, #tpu.memory_space<vmem>>, %arg3: memref<128x256xbf16, #tpu.memory_space<vmem>>, %arg4: memref<2x256xf32, #tpu.memory_space<vmem>>, %arg5: memref<2x256xf32, #tpu.memory_space<vmem>>, %arg6: memref<256x256xbf16, #tpu.memory_space<vmem>>, %arg7: memref<64x256xf32, #tpu.memory_space<vmem>>, %arg8: memref<64x256xf32, #tpu.memory_space<vmem>>) attributes {dimension_semantics = [#tpu.dimension_semantics<parallel>, #tpu.dimension_semantics<arbitrary>], iteration_bounds = array<i64: 1, 2>, scalar_prefetch = 0 : i64, scratch_operands = 1 : i64, tpu.core_type = #tpu.core_type<tc>, window_params = [{pipeline_mode = #tpu.pipeline_mode<synchronous>, transform_indices = @transform_0, window_bounds = array<i64: 64, 128>}, {transform_indices = @transform_1, window_bounds = array<i64: 128, 256>}, {pipeline_mode = #tpu.pipeline_mode<synchronous>, transform_indices = @transform_2, window_bounds = array<i64: 2, 256>}, {pipeline_mode = #tpu.pipeline_mode<synchronous>, transform_indices = @transform_3, window_bounds = array<i64: 2, 256>}, {transform_indices = @transform_4, window_bounds = array<i64: 256, 256>}, {transform_indices = @transform_5, window_bounds = array<i64: 64, 256>}]} {
    %c0_i32 = arith.constant 0 : i32
    %0 = arith.cmpi eq, %arg1, %c0_i32 : i32
    %1 = arith.extui %0 : i1 to i32
    %c0_i32_0 = arith.constant 0 : i32
    %2 = arith.cmpi ne, %1, %c0_i32_0 : i32
    scf.if %2 {
      %cst_20 = arith.constant 0.000000e+00 : f32
      %42 = vector.broadcast %cst_20 : f32 to vector<64x256xf32>
      %c0_21 = arith.constant 0 : index
      %c0_22 = arith.constant 0 : index
      %43 = vector.load %arg8[%c0_21, %c0_22] : memref<64x256xf32, #tpu.memory_space<vmem>>, vector<64x256xf32>
      tpu.vector_store %arg8[%c0_21, %c0_22], %42 {strides = array<i32>} : memref<64x256xf32, #tpu.memory_space<vmem>>, vector<64x256xf32>,
    } else {
    }
    %c0 = arith.constant 0 : index
    %c0_1 = arith.constant 0 : index
    %3 = vector.load %arg2[%c0, %c0_1] : memref<64x128xbf16, #tpu.memory_space<vmem>>, vector<64x128xbf16>
    %c0_2 = arith.constant 0 : index
    %c0_3 = arith.constant 0 : index
    %4 = vector.load %arg3[%c0_2, %c0_3] : memref<128x256xbf16, #tpu.memory_space<vmem>>, vector<128x256xbf16>
    %cst = arith.constant dense<0.000000e+00> : vector<64x256xf32>
    %5 = tpu.matmul %3, %4, %cst {dimension_numbers = #tpu.dot_dimension_numbers<[1], [0], [0], [1], [0, 0, 1, 1], [], []>} : vector<64x128xbf16>, vector<128x256xbf16>, vector<64x256xf32> -> vector<64x256xf32>
    %6 = arith.index_cast %arg1 : i32 to index
    %c0_4 = arith.constant 0 : index
    %7 = vector.load %arg4[%6, %c0_4] : memref<2x256xf32, #tpu.memory_space<vmem>>, vector<1x256xf32>
    %8 = arith.index_cast %arg1 : i32 to index
    %c0_5 = arith.constant 0 : index
    %9 = vector.load %arg5[%8, %c0_5] : memref<2x256xf32, #tpu.memory_space<vmem>>, vector<1x256xf32>
    %cst_6 = arith.constant dense<0.000000e+00> : vector<256xf32>
    %10 = vector.multi_reduction <add>, %5, %cst_6 [0] : vector<64x256xf32> to vector<256xf32>
    %11 = vector.shape_cast %10 : vector<256xf32> to vector<1x256xf32>
    %cst_7 = arith.constant 6.400000e+01 : f32
    %12 = vector.broadcast %cst_7 : f32 to vector<1x256xf32>
    %13 = arith.divf %11, %12 : vector<1x256xf32>
    %14 = vector.broadcast %13 : vector<1x256xf32> to vector<64x256xf32>
    %15 = arith.subf %5, %14 : vector<64x256xf32>
    %16 = arith.mulf %15, %15 : vector<64x256xf32>
    %cst_8 = arith.constant dense<0.000000e+00> : vector<256xf32>
    %17 = vector.multi_reduction <add>, %16, %cst_8 [0] : vector<64x256xf32> to vector<256xf32>
    %18 = vector.shape_cast %17 : vector<256xf32> to vector<1x256xf32>
    %cst_9 = arith.constant 6.400000e+01 : f32
    %19 = vector.broadcast %cst_9 : f32 to vector<1x256xf32>
    %20 = arith.divf %18, %19 : vector<1x256xf32>
    %cst_10 = arith.constant 9.99999974E-6 : f32
    %21 = vector.broadcast %cst_10 : f32 to vector<1x256xf32>
    %22 = arith.addf %20, %21 : vector<1x256xf32>
    %23 = math.rsqrt %22 : vector<1x256xf32>
    %24 = arith.mulf %7, %23 : vector<1x256xf32>
    %25 = arith.mulf %13, %24 : vector<1x256xf32>
    %26 = arith.subf %9, %25 : vector<1x256xf32>
    %27 = vector.broadcast %24 : vector<1x256xf32> to vector<64x256xf32>
    %28 = arith.mulf %5, %27 : vector<64x256xf32>
    %29 = vector.broadcast %26 : vector<1x256xf32> to vector<64x256xf32>
    %30 = arith.addf %28, %29 : vector<64x256xf32>
    %cst_11 = arith.constant 0.000000e+00 : f32
    %31 = vector.broadcast %cst_11 : f32 to vector<64x256xf32>
    %32 = arith.maximumf %30, %31 : vector<64x256xf32>
    %c0_12 = arith.constant 0 : index
    %c0_13 = arith.constant 0 : index
    %33 = vector.load %arg8[%c0_12, %c0_13] : memref<64x256xf32, #tpu.memory_space<vmem>>, vector<64x256xf32>
    %34 = arith.truncf %32 : vector<64x256xf32> to vector<64x256xbf16>
    %c0_14 = arith.constant 0 : index
    %c0_15 = arith.constant 0 : index
    %35 = vector.load %arg6[%c0_14, %c0_15] : memref<256x256xbf16, #tpu.memory_space<vmem>>, vector<256x256xbf16>
    %cst_16 = arith.constant dense<0.000000e+00> : vector<64x256xf32>
    %36 = tpu.matmul %34, %35, %cst_16 {dimension_numbers = #tpu.dot_dimension_numbers<[1], [0], [0], [1], [0, 0, 1, 1], [], []>} : vector<64x256xbf16>, vector<256x256xbf16>, vector<64x256xf32> -> vector<64x256xf32>
    %37 = arith.addf %33, %36 : vector<64x256xf32>
    %c0_17 = arith.constant 0 : index
    %c0_18 = arith.constant 0 : index
    %38 = vector.load %arg8[%c0_17, %c0_18] : memref<64x256xf32, #tpu.memory_space<vmem>>, vector<64x256xf32>
    tpu.vector_store %arg8[%c0_17, %c0_18], %37 {strides = array<i32>} : memref<64x256xf32, #tpu.memory_space<vmem>>, vector<64x256xf32>,
    %c1_i32 = arith.constant 1 : i32
    %39 = arith.cmpi eq, %arg1, %c1_i32 : i32
    %40 = arith.extui %39 : i1 to i32
    %c0_i32_19 = arith.constant 0 : i32
    %41 = arith.cmpi ne, %40, %c0_i32_19 : i32
    scf.if %41 {
      %c0_20 = arith.constant 0 : index
      %c0_21 = arith.constant 0 : index
      %42 = vector.load %arg8[%c0_20, %c0_21] : memref<64x256xf32, #tpu.memory_space<vmem>>, vector<64x256xf32>
      %cst_22 = arith.constant dense<0.000000e+00> : vector<256xf32>
      %43 = vector.multi_reduction <add>, %42, %cst_22 [0] : vector<64x256xf32> to vector<256xf32>
      %44 = vector.shape_cast %43 : vector<256xf32> to vector<1x256xf32>
      %cst_23 = arith.constant 6.400000e+01 : f32
      %45 = vector.broadcast %cst_23 : f32 to vector<1x256xf32>
      %46 = arith.divf %44, %45 : vector<1x256xf32>
      %47 = vector.broadcast %46 : vector<1x256xf32> to vector<64x256xf32>
      %48 = arith.subf %42, %47 : vector<64x256xf32>
      %49 = arith.mulf %48, %48 : vector<64x256xf32>
      %cst_24 = arith.constant dense<0.000000e+00> : vector<256xf32>
      %50 = vector.multi_reduction <add>, %49, %cst_24 [0] : vector<64x256xf32> to vector<256xf32>
      %51 = vector.shape_cast %50 : vector<256xf32> to vector<1x256xf32>
      %cst_25 = arith.constant 6.400000e+01 : f32
      %52 = vector.broadcast %cst_25 : f32 to vector<1x256xf32>
      %53 = arith.divf %51, %52 : vector<1x256xf32>
      %54 = vector.broadcast %46 : vector<1x256xf32> to vector<64x256xf32>
      %55 = arith.subf %42, %54 : vector<64x256xf32>
      %cst_26 = arith.constant 9.99999974E-6 : f32
      %56 = vector.broadcast %cst_26 : f32 to vector<1x256xf32>
      %57 = arith.addf %53, %56 : vector<1x256xf32>
      %58 = math.rsqrt %57 : vector<1x256xf32>
      %59 = vector.broadcast %58 : vector<1x256xf32> to vector<64x256xf32>
      %60 = arith.mulf %55, %59 : vector<64x256xf32>
      %c0_27 = arith.constant 0 : index
      %c0_28 = arith.constant 0 : index
      %61 = vector.load %arg7[%c0_27, %c0_28] : memref<64x256xf32, #tpu.memory_space<vmem>>, vector<64x256xf32>
      tpu.vector_store %arg7[%c0_27, %c0_28], %60 {strides = array<i32>} : memref<64x256xf32, #tpu.memory_space<vmem>>, vector<64x256xf32>,
    } else {
    }
    return
  }
  func.func @transform_0(%arg0: i32, %arg1: i32) -> (i32, i32) {
    %c0_i32 = arith.constant 0 : i32
    %c0_i32_0 = arith.constant 0 : i32
    %c0_i32_1 = arith.constant 0 : i32
    return %c0_i32, %c0_i32_0 : i32, i32
  }
  func.func @transform_1(%arg0: i32, %arg1: i32) -> (i32, i32) {
    %c0_i32 = arith.constant 0 : i32
    %c0_i32_0 = arith.constant 0 : i32
    return %c0_i32, %arg1 : i32, i32
  }
  func.func @transform_2(%arg0: i32, %arg1: i32) -> (i32, i32) {
    %c0_i32 = arith.constant 0 : i32
    %c0_i32_0 = arith.constant 0 : i32
    %c0_i32_1 = arith.constant 0 : i32
    return %c0_i32, %c0_i32_0 : i32, i32
  }
  func.func @transform_3(%arg0: i32, %arg1: i32) -> (i32, i32) {
    %c0_i32 = arith.constant 0 : i32
    %c0_i32_0 = arith.constant 0 : i32
    %c0_i32_1 = arith.constant 0 : i32
    return %c0_i32, %c0_i32_0 : i32, i32
  }
  func.func @transform_4(%arg0: i32, %arg1: i32) -> (i32, i32) {
    %c0_i32 = arith.constant 0 : i32
    return %arg1, %arg0 : i32, i32
  }
  func.func @transform_5(%arg0: i32, %arg1: i32) -> (i32, i32) {
    %c0_i32 = arith.constant 0 : i32
    %c0_i32_0 = arith.constant 0 : i32
    return %c0_i32, %arg0 : i32, i32
  }
}

</mosaic_0001>

<bundles_post_ra>
// kernel: tpu_custom_call.1
= control target key start
LH: loop header
LB: loop body
LE: loop exit
PB: predicated region body
PF: predicated region fallthrough
CT: control target
= control target key end

     0   :  { %s2244_s0 = inlined_call_operand.hbm [shape: bf16[64,128], index: 0, kind: input, shape index: {}]   ;;  %s2245_s1 = inlined_call_operand.hbm [shape: bf16[128,512], index: 1, kind: input, shape index: {}]   ;;  %s2246_s2 = inlined_call_operand.vmem [shape: f32[2,256], index: 2, kind: input, shape index: {}]   ;;  %s2247_s3 = inlined_call_operand.vmem [shape: f32[2,256], index: 3, kind: input, shape index: {}]   ;;  %s2248_s4 = inlined_call_operand.hbm [shape: bf16[512,256], index: 4, kind: input, shape index: {}]   ;;  %s2249_s5 = inlined_call_operand.hbm [shape: f32[64,256], index: 5, kind: output, shape index: {}]  }
   0x1   :  { %2258 = sst [smem:[#allocation13_spill]] %s2245_s1 }
   0x2   :  { %10 = vsyncpa [#allocation4], 0 }
   0x3   :  { %11 = vsyncpa [#allocation7], 0 }
   0x4   :  { %13 = vsyncpa [#allocation7 + $0x1], 0 }
   0x5   :  { %14 = vsyncpa [#allocation5], 0  ;;  %s1793_s18 = smov 0   ;;  %s1795_s19 = smov 0  }
   0x6   :  { %s1797_s20 = smov 0   ;;  %s1799_s21 = smov 0  }
   0x7   :  { %s1801_s22 = smov 0   ;;  %s1803_s23 = smov 0  }
   0x8 LB: > { %s29_s24 = sadd.s32 1, %s1743_s22  ;;  %s60_s25 = sadd.s32 1, %s1735_s20  ;;  %s1747_s23 = sphi %s1803_s23, %s20_s23   ;;  %s1743_s22 = sphi %s1801_s22, %s2277_s22   ;;  %s1739_s21 = sphi %s1799_s21, %s2276_s21   ;;  %s1735_s20 = sphi %s1797_s20, %s2275_s20   ;;  %s1731_s19 = sphi %s1795_s19, %s2274_s19   ;;  %s1727_s18 = sphi %s1793_s18, %s2273_s18  }
   0x9   : > { %p30_p0 = scmp.ge.s32.totalorder %s29_s24, 2  ;;  %p67_p1 = scmp.ne.s32.totalorder %s1735_s20, %s1731_s19 }
   0xa   : > { %p68_p2 = scmp.eq.s32.totalorder %s1747_s23, 0  ;;  %p1427_p4 = scmp.lt.s32.totalorder %s1747_s23, 2 }
   0xb   : > { %s2279_s24 = smov (%p30_p0, %s29_s24), 0  ;;  %s212_s27 = sand.u32 1, %s1747_s23  }
   0xc   : > { %p69_p3 = por %p68_p2, %p67_p1  ;;  %s57_s26 = ssub.s32 %s1743_s22, %s2279_s24 }
   0xd   : > { %p58_p5 = scmp.eq.s32.totalorder %s57_s26, 0  ;;  %s214_s28 = sand.u32 1, %s1735_s20  }
   0xe   : > { %s1399_s29 = sshll.u32 %s1743_s22, 7  ;;  %s1328_s6 = sshll.u32 %s214_s28, 7 }
   0xf   : > { %s1837_s30 = scalar_select %p58_p5, %s1735_s20, %s60_s25  }
  0x10   : > { %s2259_s1 = sld [smem:[#allocation13_spill]]  ;;  %p1846_p6 = pnand %p1427_p4, %p69_p3 }
  0x11   : > { %s216_s11 = scalar_lea.vmem [#allocation6], %s1328_s6  ;;  %s1852_s13 = scalar_lea.sflag [#allocation7], %s212_s27 }
  0x12   : > { %s2260_s10 = scalar_select %p1846_p6, 1, 0 }
  0x13   : > { %s223_s12 = sshll.u32 %s216_s11, 4  ;;  %p2253_p8 = pneg %p1846_p6  ;;  %s1850_s12 = int_to_ptr.vmem [resolvable:$true] %s223_s12 }
  0x16   : > { %s1844_s9 = scalar_lea.hbm %s2259_s1, %s1399_s29  ;;  %s1580_s17 = scalar_lea.hbm %s2259_s1, 4096 }
  0x17   : > { %s1575_s14 = scalar_lea.hbm %s1844_s9, 2048  ;;  %p1581_p11 = scmp.lt.u32.totalorder %s1844_s9, %s2259_s1 }
  0x18   : > { %p1576_p7 = scmp.ne.s32.totalorder %s1844_s9, %s1575_s14  ;;  %p1582_p12 = scmp.lt.u32.totalorder %s1580_s17, %s1575_s14 }
  0x19   : > { %p1584_p0 = scmp.lt.u32.totalorder %s1575_s14, %s1844_s9 }
  0x1a   : > { %p1578_p9 = pnand %p2253_p8, %p1576_p7  ;;  %p1583_p13 = por %p1582_p12, %p1581_p11 }
  0x1c   : > { %p1579_p10 = pneg %p1578_p9  ;;  %p1585_p1 = por %p1584_p0, %p1583_p13 }
  0x1e   : > { %p1586_p2 = pnand %p1585_p1, %p1579_p10 }
  0x20   : > { %1589 = shalt.err (!%p1586_p2)
}
  0x21   : > { %s1590_s27 = scalar_lea.vmem %s1850_s12, 2048  ;;  %s1749_s29 = smov [#allocation6]  }
  0x22   : > { %p1591_p3 = scmp.ne.s32.totalorder %s1850_s12, %s1590_s27  ;;  %s1595_s6 = sshll.u32 %s1749_s29, 4  ;;  %s1596_s6 = int_to_ptr.vmem [resolvable:$false] %s1595_s6 }
  0x23   : > { %s1597_s7 = scalar_lea.vmem %s1596_s6, 4096  ;;  %p1598_p7 = scmp.lt.s32.totalorder %s1850_s12, %s1596_s6 }
  0x24   : > { %p1593_p4 = pnand %p1591_p3, %p2253_p8  ;;  %p1599_p9 = scmp.lt.s32.totalorder %s1597_s7, %s1590_s27 }
  0x26   : > { %p1594_p5 = pneg %p1593_p4  ;;  %p1600_p11 = por %p1599_p9, %p1598_p7 }
  0x28   : > { %p1601_p12 = pnand %p1600_p11, %p1594_p5 }
  0x2a   : > { %1604 = shalt.err (!%p1601_p12)
}
  0x2b   : > { %s1750_s8 = smov 256   ;;  %s2250_s11 = smov 128  }
  0x2c   : > { %s2251_s14 = smov 8   ;;  %s1883_s15 = sadd.s32 4294967295, %s1747_s23  }
  0x2d   : > { %1422 = dma.hbm_to_vmem [thread:$0]  (!%p1846_p6), %s1844_s9, 2048, %s1850_s12, %s1852_s13, %s1750_s8, %s2250_s11, %s2251_s14  }
  0x2e   : > { %p73_p10 = scmp.ne.s32.totalorder %s1731_s19, %s1727_s18  ;;  %p2252_p13 = scmp.eq.s32.totalorder %s1883_s15, 0 }
  0x2f   : > { %p1325_p0 = scmp.ge.s32.totalorder %s1747_s23, 1  ;;  %p180_p1 = scmp.lt.s32.totalorder %s1747_s23, 3 }
  0x30   : > { %p1892_p2 = por %p2252_p13, %p73_p10  ;;  %s1753_s9 = smov [#allocation3]  }
  0x31   : > { %p1896_p3 = pnand %p1325_p0, %p180_p1  ;;  %s192_s12 = sshll.u32 %s1753_s9, 4  ;;  %s1900_s12 = int_to_ptr.vmem [resolvable:$true] %s192_s12 }
  0x32   : > { %s2261_s16 = scalar_select %p1892_p2, 1, 0 }
  0x33   : > { %s2262_s17 = scalar_select %p1896_p3, 1, 0 }
  0x34   : > { %p1415_p4 = pneg %p1896_p3  ;;  %s1331_s18 = sshll.u32 %s214_s28, 8 }
  0x35   : > { %s1401_s25 = sshll.u32 %s1743_s22, 12  ;;  %s237_s7 = scalar_lea.vmem [#allocation8], %s1331_s18 }
  0x36   : > { %p1909_p5 = pnand %p1415_p4, %p2252_p13  ;;  %s1916_s6 = scalar_lea.hbm %s2248_s4, %s1401_s25 }
  0x37   : > { %s247_s8 = sshll.u32 %s237_s7, 4  ;;  %s1605_s28 = scalar_lea.hbm %s2244_s0, 512  ;;  %s1918_s8 = int_to_ptr.vmem [resolvable:$true] %s247_s8 }
  0x38   : > { %p1606_p7 = scmp.ne.s32.totalorder %s2244_s0, %s1605_s28  ;;  %p1607_p9 = pneg %p1909_p5 }
  0x39   : > { %p1612_p10 = scmp.lt.u32.totalorder %s1605_s28, %s2244_s0 }
  0x3a   : > { %p1608_p11 = pnand %p1607_p9, %p1606_p7 }
  0x3c   : > { %p1609_p12 = pneg %p1608_p11 }
  0x3e   : > { %p1614_p0 = pnand %p1612_p10, %p1609_p12 }
  0x40   : > { %1617 = shalt.err (!%p1614_p0)
}
  0x41   : > { %s1618_s18 = scalar_lea.vmem %s1900_s12, 512  ;;  %p1626_p8 = scmp.lt.s32.totalorder %s1900_s12, %s1900_s12 }
  0x42   : > { %p1619_p1 = scmp.ne.s32.totalorder %s1900_s12, %s1618_s18  ;;  %p1627_p2 = scmp.lt.s32.totalorder %s1618_s18, %s1618_s18 }
  0x44   : > { %p1621_p4 = pnand %p1619_p1, %p1607_p9  ;;  %p1628_p3 = por %p1627_p2, %p1626_p8 }
  0x46   : > { %p1622_p13 = pneg %p1621_p4 }
  0x48   : > { %p1629_p6 = pnand %p1628_p3, %p1622_p13 }
  0x4a   : > { %1632 = shalt.err (!%p1629_p6)
}
  0x4b   : > { %s1754_s1 = smov 64   ;;  %s1755_s11 = smov 4  }
  0x4c   : > { %1418 = dma.hbm_to_vmem [thread:$0]  (!%p1909_p5), %s2244_s0, 512, %s1900_s12, [#allocation4], %s1754_s1, %s1754_s1, %s1755_s11  }
  0x4d   : > { %s1633_s7 = scalar_lea.hbm %s1916_s6, 4096  ;;  %p2264_p9 = scmp.ne.s32.totalorder %s2260_s10, 0 }
  0x4e   : > { %p1634_p7 = scmp.ne.s32.totalorder %s1916_s6, %s1633_s7  ;;  %s1638_s27 = scalar_lea.hbm %s2248_s4, 8192 }
  0x4f   : > { %p2265_p8 = pneg %p2264_p9  ;;  %p1639_p2 = scmp.lt.u32.totalorder %s1916_s6, %s2248_s4 }
  0x50   : > { %p1640_p3 = scmp.lt.u32.totalorder %s1638_s27, %s1633_s7  ;;  %p1642_p12 = scmp.lt.u32.totalorder %s1633_s7, %s1916_s6 }
  0x51   : > { %p1636_p13 = pnand %p1634_p7, %p2265_p8 }
  0x52   : > { %p1641_p11 = por %p1640_p3, %p1639_p2 }
  0x53   : > { %p1637_p6 = pneg %p1636_p13 }
  0x54   : > { %p1643_p10 = por %p1642_p12, %p1641_p11 }
  0x56   : > { %p1644_p0 = pnand %p1643_p10, %p1637_p6 }
  0x58   : > { %1647 = shalt.err (!%p1644_p0)
}
  0x59   : > { %s1648_s12 = scalar_lea.vmem %s1918_s8, 4096  ;;  %p2266_p1 = pmov %p2265_p8 }
  0x5a   : > { %p1649_p5 = scmp.ne.s32.totalorder %s1918_s8, %s1648_s12  ;;  %s1756_s26 = smov [#allocation8]  }
  0x5b   : > { %s1653_s1 = sshll.u32 %s1756_s26, 4  ;;  %s1654_s1 = int_to_ptr.vmem [resolvable:$false] %s1653_s1 }
  0x5c   : > { %p1651_p4 = pnand %p1649_p5, %p2266_p1  ;;  %s1655_s11 = scalar_lea.vmem %s1654_s1, 8192 }
  0x5d   : > { %p1656_p8 = scmp.lt.s32.totalorder %s1918_s8, %s1654_s1  ;;  %p1657_p13 = scmp.lt.s32.totalorder %s1655_s11, %s1648_s12 }
  0x5e   : > { %p1652_p7 = pneg %p1651_p4 }
  0x5f   : > { %p1658_p2 = por %p1657_p13, %p1656_p8 }
  0x61   : > { %p1659_p3 = pnand %p1658_p2, %p1652_p7 }
  0x63   : > { %1662 = shalt.err (!%p1659_p3)
}
  0x64   : > { %s2267_s14 = smov 8   ;;  %s2268_s25 = smov 128  }
  0x65   : > { %1425 = dma.hbm_to_vmem [thread:$0]  (!%p2264_p9), %s1916_s6, 4096, %s1918_s8, %s1852_s13, %s2268_s25, %s2268_s25, %s2267_s14  }
  0x66   : > { %p2269_p6 = scmp.ne.s32.totalorder %s2262_s17, 0 }
  0x67   : > { %p2270_p11 = scmp.eq.s32.totalorder (!%p2269_p6), %s1883_s15, 0 }
  0x68   : > { %259 = sbr.rel (%p2269_p6) target bundleno = 836 (0x344), region = 40 }
  0x6f   : > { %1714 = dma.done.wait (%p2270_p11), [#allocation4], 512   ;;  %p2271_p12 = pmov %p2270_p11 }
  0x70   : > { %s265_s10 = sand.u32 1, %s1883_s15   ;;  %s267_s7 = sand.u32 1, %s1731_s19  }
  0x71   : > { %1716 = vsyncadd (%p2271_p12), [#allocation4], 4294966784  ;;  %s1337_s9 = sshll.u32 %s267_s7, 7  ;;  %s266_s28 = scalar_lea.sflag [#allocation7], %s265_s10 }
  0x72   : > { %s1976_s27 = scalar_lea.vmem [#allocation6], %s1337_s9  ;;  %p2272_p10 = scmp.ne.s32.totalorder %s2261_s16, 0 }
  0x74   : > { %1718 = dma.done.wait (%p2272_p10), %s266_s28, 6144  }
  0x75   : > { %1720 = vsyncadd (%p2272_p10), %s266_s28, 4294961152  ;;  %s1338_s13 = sshll.u32 %s267_s7, 8  ;;  %p1339_p9 = scmp.ne.s32.totalorder %s1739_s21, 0 }
  0x76   : > { %s1982_s17 = scalar_lea.vmem [#allocation8], %s1338_s13  ;;  %v1757_v0 = vmov (!%p1339_p9), 0.0  }
  0x77   : > { %313 = sbr.rel (%p1339_p9) target bundleno = 127 (0x7f), region = 56  ;;  %314 = vst [vmem:[#allocation2] sm:$0xff] (!%p1339_p9), %v1757_v0  ;;  %315 = vst [vmem:[#allocation2 + $0x8] sm:$0xff] (!%p1339_p9), %v1757_v0 }
  0x78   : > { %316 = vst [vmem:[#allocation2 + $0x10] sm:$0xff] (!%p1339_p9), %v1757_v0  ;;  %317 = vst [vmem:[#allocation2 + $0x18] sm:$0xff] (!%p1339_p9), %v1757_v0 }
  0x79   : > { %318 = vst [vmem:[#allocation2 + $0x20] sm:$0xff] (!%p1339_p9), %v1757_v0  ;;  %319 = vst [vmem:[#allocation2 + $0x28] sm:$0xff] (!%p1339_p9), %v1757_v0 }
  0x7a   : > { %320 = vst [vmem:[#allocation2 + $0x30] sm:$0xff] (!%p1339_p9), %v1757_v0  ;;  %321 = vst [vmem:[#allocation2 + $0x38] sm:$0xff] (!%p1339_p9), %v1757_v0 }
  0x7b   : > { %322 = vst [vmem:[#allocation2 + $0x40] sm:$0xff] (!%p1339_p9), %v1757_v0  ;;  %323 = vst [vmem:[#allocation2 + $0x48] sm:$0xff] (!%p1339_p9), %v1757_v0 }
  0x7c   : > { %324 = vst [vmem:[#allocation2 + $0x50] sm:$0xff] (!%p1339_p9), %v1757_v0  ;;  %325 = vst [vmem:[#allocation2 + $0x58] sm:$0xff] (!%p1339_p9), %v1757_v0 }
  0x7d   : > { %326 = vst [vmem:[#allocation2 + $0x60] sm:$0xff] (!%p1339_p9), %v1757_v0  ;;  %327 = vst [vmem:[#allocation2 + $0x68] sm:$0xff] (!%p1339_p9), %v1757_v0 }
  0x7e   : > { %328 = vst [vmem:[#allocation2 + $0x70] sm:$0xff] %v1757_v0  ;;  %329 = vst [vmem:[#allocation2 + $0x78] sm:$0xff] %v1757_v0 }
  0x7f PF: > { %v1491_v1 = vld [vmem:[%s1976_s27 + $0x4] ss:$8 sps:$4 sm:$0xff]   ;;  %v1493_v2 = vld [vmem:[%s1976_s27] ss:$8 sps:$4 sm:$0xff]   ;;  %v1758_v3 = vmov 0   ;;  %v1517_v20 = vld [vmem:[#allocation3 + $0x10] sm:$0xff]  }
  0x80   : > { %490 = vmatprep.mubr.bf16.mxu0 %v1758_v3  ;;  %458 = vmatprep.subr.bf16.mxu0 %v1491_v1  ;;  %v1494_v4 = vld [vmem:[%s1976_s27 + $0x14] ss:$8 sps:$4 sm:$0xff]   ;;  %v1496_v5 = vld [vmem:[%s1976_s27 + $0x10] ss:$8 sps:$4 sm:$0xff]   ;;  %v1497_v6 = vld [vmem:[%s1976_s27 + $0x24] ss:$8 sps:$4 sm:$0xff]  }
  0x81   : > { %459 = vmatpush1.bf16.msra.mxu0 %v1493_v2  ;;  %v1499_v7 = vld [vmem:[%s1976_s27 + $0x20] ss:$8 sps:$4 sm:$0xff]   ;;  %v1500_v8 = vld [vmem:[%s1976_s27 + $0x34] ss:$8 sps:$4 sm:$0xff]   ;;  %v1502_v9 = vld [vmem:[%s1976_s27 + $0x30] ss:$8 sps:$4 sm:$0xff]  }
  0x82   : > { %460 = vmatprep.subr.bf16.mxu0 %v1494_v4  ;;  %v1503_v10 = vld [vmem:[%s1976_s27 + $0x44] ss:$8 sps:$4 sm:$0xff]   ;;  %v1505_v11 = vld [vmem:[%s1976_s27 + $0x40] ss:$8 sps:$4 sm:$0xff]   ;;  %v1506_v12 = vld [vmem:[%s1976_s27 + $0x54] ss:$8 sps:$4 sm:$0xff]  }
  0x83   : > { %v1508_v13 = vld [vmem:[%s1976_s27 + $0x50] ss:$8 sps:$4 sm:$0xff]   ;;  %v1509_v14 = vld [vmem:[%s1976_s27 + $0x64] ss:$8 sps:$4 sm:$0xff]   ;;  %v1511_v15 = vld [vmem:[%s1976_s27 + $0x60] ss:$8 sps:$4 sm:$0xff]  }
  0x84   : > { %v1512_v16 = vld [vmem:[%s1976_s27 + $0x74] ss:$8 sps:$4 sm:$0xff]   ;;  %v1514_v17 = vld [vmem:[%s1976_s27 + $0x70] ss:$8 sps:$4 sm:$0xff]   ;;  %v1515_v18 = vld [vmem:[#allocation3] sm:$0xff]   ;;  %s531_s16 = sshra.s32 %s1739_s21, 1 }
  0x85   : > { %461 = vmatpush1.bf16.msra.mxu0 %v1496_v5  ;;  %v1516_v19 = vld [vmem:[#allocation3 + $0x8] sm:$0xff]   ;;  %v1518_v21 = vld [vmem:[#allocation3 + $0x18] sm:$0xff]   ;;  %s534_s6 = sand.u32 1, %s1739_s21  ;;  %s1402_s8 = sshll.u32 %s531_s16, 2 }
  0x86   : > { %462 = vmatprep.subr.bf16.mxu0 %v1497_v6  ;;  %v1519_v22 = vld [vmem:[%s1982_s17 + $0x4] ss:$8 sps:$4 sm:$0xff]   ;;  %v1521_v23 = vld [vmem:[%s1982_s17] ss:$8 sps:$4 sm:$0xff]   ;;  %v1522_v24 = vld [vmem:[%s1982_s17 + $0x14] ss:$8 sps:$4 sm:$0xff]   ;;  %s2119_s29 = sadd.s32 %s1402_s8, %s534_s6 }
  0x87   : > { %961 = vmatprep.subr.bf16.mxu1 %v1519_v22  ;;  %v1524_v25 = vld [vmem:[%s1982_s17 + $0x10] ss:$8 sps:$4 sm:$0xff]   ;;  %v1525_v26 = vld [vmem:[%s1982_s17 + $0x24] ss:$8 sps:$4 sm:$0xff]   ;;  %v1527_v27 = vld [vmem:[%s1982_s17 + $0x20] ss:$8 sps:$4 sm:$0xff]   ;;  %s538_s26 = scalar_lea.vmem %s2246_s2, %s2119_s29  ;;  %s540_s14 = scalar_lea.vmem %s2247_s3, %s2119_s29 }
  0x88   : > { %962 = vmatpush1.bf16.msra.mxu1 %v1521_v23  ;;  %v1528_v28 = vld [vmem:[%s1982_s17 + $0x34] ss:$8 sps:$4 sm:$0xff]   ;;  %v1530_v29 = vld [vmem:[%s1982_s17 + $0x30] ss:$8 sps:$4 sm:$0xff]   ;;  %v1531_v30 = vld [vmem:[%s1982_s17 + $0x44] ss:$8 sps:$4 sm:$0xff]  }
  0x89   : > { %463 = vmatpush1.bf16.msra.mxu0 %v1499_v7  ;;  %963 = vmatprep.subr.bf16.mxu1 %v1522_v24  ;;  %v1533_v31 = vld [vmem:[%s1982_s17 + $0x40] ss:$8 sps:$4 sm:$0xff]   ;;  %v1534_v32 = vld [vmem:[%s1982_s17 + $0x54] ss:$8 sps:$4 sm:$0xff]   ;;  %v1536_v33 = vld [vmem:[%s1982_s17 + $0x50] ss:$8 sps:$4 sm:$0xff]  }
  0x8a   : > { %464 = vmatprep.subr.bf16.mxu0 %v1500_v8  ;;  %v1537_v34 = vld [vmem:[%s1982_s17 + $0x64] ss:$8 sps:$4 sm:$0xff]   ;;  %v1539_v35 = vld [vmem:[%s1982_s17 + $0x60] ss:$8 sps:$4 sm:$0xff]   ;;  %v1540_v36 = vld [vmem:[%s1982_s17 + $0x74] ss:$8 sps:$4 sm:$0xff]  }
  0x8b   : > { %v1542_v37 = vld [vmem:[%s1982_s17 + $0x70] ss:$8 sps:$4 sm:$0xff]   ;;  %v1543_v38 = vld [vmem:[%s1982_s17 + $0x84] ss:$8 sps:$4 sm:$0xff]   ;;  %v1545_v39 = vld [vmem:[%s1982_s17 + $0x80] ss:$8 sps:$4 sm:$0xff]  }
  0x8c   : > { %964 = vmatpush1.bf16.msra.mxu1 %v1524_v25  ;;  %v1546_v40 = vld [vmem:[%s1982_s17 + $0x94] ss:$8 sps:$4 sm:$0xff]   ;;  %v1548_v41 = vld [vmem:[%s1982_s17 + $0x90] ss:$8 sps:$4 sm:$0xff]   ;;  %v1549_v42 = vld [vmem:[%s1982_s17 + $0xa4] ss:$8 sps:$4 sm:$0xff]  }
  0x8d   : > { %465 = vmatpush1.bf16.msra.mxu0 %v1502_v9  ;;  %965 = vmatprep.subr.bf16.mxu1 %v1525_v26  ;;  %v1551_v43 = vld [vmem:[%s1982_s17 + $0xa0] ss:$8 sps:$4 sm:$0xff]   ;;  %v1552_v44 = vld [vmem:[%s1982_s17 + $0xb4] ss:$8 sps:$4 sm:$0xff]   ;;  %v1554_v45 = vld [vmem:[%s1982_s17 + $0xb0] ss:$8 sps:$4 sm:$0xff]  }
  0x8e   : > { %466 = vmatprep.subr.bf16.mxu0 %v1503_v10  ;;  %v1555_v46 = vld [vmem:[%s1982_s17 + $0xc4] ss:$8 sps:$4 sm:$0xff]   ;;  %v1557_v47 = vld [vmem:[%s1982_s17 + $0xc0] ss:$8 sps:$4 sm:$0xff]   ;;  %v1558_v48 = vld [vmem:[%s1982_s17 + $0xd4] ss:$8 sps:$4 sm:$0xff]  }
  0x8f   : > { %v1560_v49 = vld [vmem:[%s1982_s17 + $0xd0] ss:$8 sps:$4 sm:$0xff]   ;;  %v1561_v50 = vld [vmem:[%s1982_s17 + $0xe4] ss:$8 sps:$4 sm:$0xff]   ;;  %v1563_v51 = vld [vmem:[%s1982_s17 + $0xe0] ss:$8 sps:$4 sm:$0xff]  }
  0x90   : > { %966 = vmatpush1.bf16.msra.mxu1 %v1527_v27  ;;  %v1564_v52 = vld [vmem:[%s1982_s17 + $0xf4] ss:$8 sps:$4 sm:$0xff]   ;;  %v1566_v53 = vld [vmem:[%s1982_s17 + $0xf0] ss:$8 sps:$4 sm:$0xff]   ;;  %p1394_p0 = scmp.ne.s32.totalorder %s1739_s21, 1 }
  0x91   : > { %467 = vmatpush1.bf16.msra.mxu0 %v1505_v11  ;;  %967 = vmatprep.subr.bf16.mxu1 %v1528_v28 }
  0x92   : > { %468 = vmatprep.subr.bf16.mxu0 %v1506_v12 }
  0x94   : > { %968 = vmatpush1.bf16.msra.mxu1 %v1530_v29 }
  0x95   : > { %469 = vmatpush1.bf16.msra.mxu0 %v1508_v13  ;;  %969 = vmatprep.subr.bf16.mxu1 %v1531_v30 }
  0x96   : > { %470 = vmatprep.subr.bf16.mxu0 %v1509_v14 }
  0x98   : > { %970 = vmatpush1.bf16.msra.mxu1 %v1533_v31 }
  0x99   : > { %471 = vmatpush1.bf16.msra.mxu0 %v1511_v15  ;;  %971 = vmatprep.subr.bf16.mxu1 %v1534_v32 }
  0x9a   : > { %472 = vmatprep.subr.bf16.mxu0 %v1512_v16 }
  0x9c   : > { %972 = vmatpush1.bf16.msra.mxu1 %v1536_v33 }
  0x9d   : > { %473 = vmatpush1.bf16.msra.mxu0 %v1514_v17  ;;  %973 = vmatprep.subr.bf16.mxu1 %v1537_v34 }
  0xa0   : > { %491 = vmatmul.mubr.bf16.vlgmr.msra.gmra.mrb[0].mxu0 %v1515_v18  ;;  %974 = vmatpush1.bf16.msra.mxu1 %v1539_v35 }
  0xa1   : > { %500 = vmatprep.mubr.bf16.mxu0 %v1758_v3  ;;  %975 = vmatprep.subr.bf16.mxu1 %v1540_v36 }
  0xa4   : > { %976 = vmatpush1.bf16.msra.mxu1 %v1542_v37 }
  0xa5   : > { %977 = vmatprep.subr.bf16.mxu1 %v1543_v38 }
  0xa8   : > { %501 = vmatmul.mubr.bf16.gmra.mrb[4].mxu0 %v1516_v19  ;;  %978 = vmatpush1.bf16.msra.mxu1 %v1545_v39 }
  0xa9   : > { %510 = vmatprep.mubr.bf16.mxu0 %v1758_v3  ;;  %979 = vmatprep.subr.bf16.mxu1 %v1546_v40 }
  0xac   : > { %980 = vmatpush1.bf16.msra.mxu1 %v1548_v41 }
  0xad   : > { %981 = vmatprep.subr.bf16.mxu1 %v1549_v42 }
  0xb0   : > { %511 = vmatmul.mubr.bf16.gmra.mrb[8].mxu0 %v1517_v20  ;;  %982 = vmatpush1.bf16.msra.mxu1 %v1551_v43 }
  0xb1   : > { %520 = vmatprep.mubr.bf16.mxu0 %v1758_v3  ;;  %983 = vmatprep.subr.bf16.mxu1 %v1552_v44 }
  0xb4   : > { %984 = vmatpush1.bf16.msra.mxu1 %v1554_v45 }
  0xb5   : > { %985 = vmatprep.subr.bf16.mxu1 %v1555_v46 }
  0xb8   : > { %521 = vmatmul.mubr.bf16.gmra.mrb[12].mxu0 %v1518_v21  ;;  %986 = vmatpush1.bf16.msra.mxu1 %v1557_v47 }
  0xb9   : > { %987 = vmatprep.subr.bf16.mxu1 %v1558_v48 }
  0xbc   : > { %988 = vmatpush1.bf16.msra.mxu1 %v1560_v49 }
  0xbd   : > { %989 = vmatprep.subr.bf16.mxu1 %v1561_v50 }
  0xc0   : > { %990 = vmatpush1.bf16.msra.mxu1 %v1563_v51 }
  0xc1   : > { %991 = vmatprep.subr.bf16.mxu1 %v1564_v52 }
  0xc4   : > { %992 = vmatpush1.bf16.msra.mxu1 %v1566_v53 }
 0x173   : > { %v2033_v54 = vpop.f32.mrb[0].mxu0 }
 0x174   : > { %v2035_v55 = vpop.f32.mrb[1].mxu0 }
 0x175   : > { %v2037_v56 = vpop.f32.mrb[2].mxu0 }
 0x176   : > { %v542_v57 = vadd.f32 %v2037_v56, %v2033_v54  ;;  %v2041_v58 = vpop.f32.mrb[3].mxu0 }
 0x177   : > { %v555_v59 = vadd.f32 %v2041_v58, %v2035_v55 }
 0x17b   : > { %v2045_v60 = vpop.f32.mrb[4].mxu0 }
 0x17c   : > { %v543_v61 = vadd.f32 %v542_v57, %v2045_v60  ;;  %v2048_v62 = vpop.f32.mrb[5].mxu0 }
 0x17d   : > { %v556_v63 = vadd.f32 %v555_v59, %v2048_v62  ;;  %v2051_v0 = vpop.f32.mrb[6].mxu0 }
 0x17e   : > { %v544_v1 = vadd.f32 %v543_v61, %v2051_v0  ;;  %v2054_v2 = vpop.f32.mrb[7].mxu0 }
 0x17f   : > { %v557_v3 = vadd.f32 %v556_v63, %v2054_v2 }
 0x183   : > { %v2057_v4 = vpop.f32.mrb[8].mxu0 }
 0x184   : > { %v545_v5 = vadd.f32 %v544_v1, %v2057_v4  ;;  %v2060_v6 = vpop.f32.mrb[9].mxu0 }
 0x185   : > { %v558_v7 = vadd.f32 %v557_v3, %v2060_v6  ;;  %v2063_v8 = vpop.f32.mrb[10].mxu0 }
 0x186   : > { %v546_v9 = vadd.f32 %v545_v5, %v2063_v8  ;;  %v2066_v10 = vpop.f32.mrb[11].mxu0 }
 0x187   : > { %v559_v11 = vadd.f32 %v558_v7, %v2066_v10 }
 0x18b   : > { %v2069_v12 = vpop.f32.mrb[12].mxu0 }
 0x18c   : > { %v547_v13 = vadd.f32 %v546_v9, %v2069_v12  ;;  %v2072_v14 = vpop.f32.mrb[13].mxu0 }
 0x18d   : > { %v560_v15 = vadd.f32 %v559_v11, %v2072_v14  ;;  %v2075_v16 = vpop.f32.mrb[14].mxu0 }
 0x18e   : > { %v548_v17 = vadd.f32 %v547_v13, %v2075_v16  ;;  %v2078_v18 = vpop.f32.mrb[15].mxu0 }
 0x18f   : > { %v561_v19 = vadd.f32 %v560_v15, %v2078_v18 }
 0x190   : > { %v549_v20 = vrot.slane %v548_v17, 4 }
 0x191   : > { %v562_v21 = vrot.slane %v561_v19, 4 }
 0x192   : > { %v550_v22 = vadd.f32 %v549_v20, %v548_v17 }
 0x193   : > { %v563_v23 = vadd.f32 %v562_v21, %v561_v19 }
 0x194   : > { %v551_v24 = vrot.slane %v550_v22, 2 }
 0x195   : > { %v564_v25 = vrot.slane %v563_v23, 2 }
 0x196   : > { %v552_v26 = vadd.f32 %v551_v24, %v550_v22 }
 0x197   : > { %v565_v27 = vadd.f32 %v564_v25, %v563_v23 }
 0x198   : > { %v553_v28 = vrot.slane %v552_v26, 1 }
 0x199   : > { %v566_v29 = vrot.slane %v565_v27, 1 }
 0x19a   : > { %v554_v30 = vadd.f32 %v553_v28, %v552_v26 }
 0x19b   : > { %v567_v31 = vadd.f32 %v566_v29, %v565_v27 }
 0x19c   : > { %v2081_v32 = vmul.f32 0.015625, %v554_v30 }
 0x19d   : > { %v2083_v33 = vmul.f32 0.015625, %v567_v31 }
 0x19e   : > { %v571_v34 = vsub.f32 %v2033_v54, %v2081_v32  ;;  %v573_v35 = vsub.f32 %v2037_v56, %v2081_v32  ;;  %v575_v36 = vsub.f32 %v2045_v60, %v2081_v32  ;;  %v577_v37 = vsub.f32 %v2051_v0, %v2081_v32 }
 0x19f   : > { %v579_v38 = vsub.f32 %v2057_v4, %v2081_v32  ;;  %v581_v39 = vsub.f32 %v2063_v8, %v2081_v32  ;;  %v583_v40 = vsub.f32 %v2069_v12, %v2081_v32  ;;  %v585_v41 = vsub.f32 %v2075_v16, %v2081_v32 }
 0x1a0   : > { %v587_v42 = vmul.f32 %v571_v34, %v571_v34  ;;  %v589_v43 = vmul.f32 %v573_v35, %v573_v35  ;;  %v591_v44 = vmul.f32 %v575_v36, %v575_v36  ;;  %v593_v45 = vmul.f32 %v577_v37, %v577_v37 }
 0x1a1   : > { %v572_v47 = vsub.f32 %v2035_v55, %v2083_v33  ;;  %v574_v48 = vsub.f32 %v2041_v58, %v2083_v33  ;;  %v576_v49 = vsub.f32 %v2048_v62, %v2083_v33  ;;  %v578_v50 = vsub.f32 %v2054_v2, %v2083_v33 }
 0x1a2   : > { %v603_v46 = vadd.f32 %v589_v43, %v587_v42  ;;  %v580_v51 = vsub.f32 %v2060_v6, %v2083_v33  ;;  %v582_v52 = vsub.f32 %v2066_v10, %v2083_v33  ;;  %v584_v53 = vsub.f32 %v2072_v14, %v2083_v33 }
 0x1a3   : > { %v586_v59 = vsub.f32 %v2078_v18, %v2083_v33  ;;  %v588_v61 = vmul.f32 %v572_v47, %v572_v47  ;;  %v590_v63 = vmul.f32 %v574_v48, %v574_v48  ;;  %v595_v1 = vmul.f32 %v579_v38, %v579_v38 }
 0x1a4   : > { %v604_v57 = vadd.f32 %v603_v46, %v591_v44  ;;  %v592_v5 = vmul.f32 %v576_v49, %v576_v49  ;;  %v597_v9 = vmul.f32 %v581_v39, %v581_v39  ;;  %v594_v13 = vmul.f32 %v578_v50, %v578_v50 }
 0x1a5   : > { %v616_v7 = vadd.f32 %v590_v63, %v588_v61  ;;  %v599_v17 = vmul.f32 %v583_v40, %v583_v40  ;;  %v596_v20 = vmul.f32 %v580_v51, %v580_v51  ;;  %v601_v22 = vmul.f32 %v585_v41, %v585_v41 }
 0x1a6   : > { %v605_v3 = vadd.f32 %v604_v57, %v593_v45  ;;  %v598_v24 = vmul.f32 %v582_v52, %v582_v52  ;;  %v600_v27 = vmul.f32 %v584_v53, %v584_v53  ;;  %v602_v30 = vmul.f32 %v586_v59, %v586_v59 }
 0x1a7   : > { %v617_v15 = vadd.f32 %v616_v7, %v592_v5  ;;  %v1759_v50 = vmov 1966171168   ;;  %v641_v52 = vlaneseq  ;;  %v539_v5 = vld [vmem:[%s538_s26] ss:$2 sm:$0x3] }
 0x1a8   : > { %v606_v11 = vadd.f32 %v605_v3, %v595_v1  ;;  %v639_v51 = vunpack.c.l.s4 %v1759_v50 }
 0x1a9   : > { %v618_v21 = vadd.f32 %v617_v15, %v594_v13  ;;  %v642_v57 = vshrl.u32 %v641_v52, 7 }
 0x1aa   : > { %v607_v19 = vadd.f32 %v606_v11, %v597_v9  ;;  %v640_v53 = vunpack.c.0.s8 %v639_v51 }
 0x1ab   : > { %v619_v25 = vadd.f32 %v618_v21, %v596_v20  ;;  %v657_v9 = vsub.s32 0, %v642_v57  ;;  %v661_v11 = vsub.s32 1, %v642_v57 }
 0x1ac   : > { %v608_v23 = vadd.f32 %v607_v19, %v599_v17  ;;  %v643_v61 = vsub.s32 %v640_v53, %v642_v57 }
 0x1ad   : > { %v620_v28 = vadd.f32 %v619_v25, %v598_v24 }
 0x1ae   : > { %v609_v26 = vadd.f32 %v608_v23, %v601_v22 }
 0x1af   : > { %v621_v31 = vadd.f32 %v620_v28, %v600_v27 }
 0x1b0   : > { %v610_v29 = vrot.slane %v609_v26, 4 }
 0x1b1   : > { %v622_v35 = vadd.f32 %v621_v31, %v602_v30 }
 0x1b2   : > { %v611_v34 = vadd.f32 %v610_v29, %v609_v26 }
 0x1b3   : > { %v623_v37 = vrot.slane %v622_v35, 4 }
 0x1b4   : > { %v612_v36 = vrot.slane %v611_v34, 2 }
 0x1b5   : > { %v624_v39 = vadd.f32 %v623_v37, %v622_v35 }
 0x1b6   : > { %v613_v38 = vadd.f32 %v612_v36, %v611_v34 }
 0x1b7   : > { %v625_v42 = vrot.slane %v624_v39, 2 }
 0x1b8   : > { %v614_v40 = vrot.slane %v613_v38, 1 }
 0x1b9   : > { %v626_v43 = vadd.f32 %v625_v42, %v624_v39 }
 0x1ba   : > { %v615_v41 = vadd.f32 %v614_v40, %v613_v38 }
 0x1bb   : > { %v627_v45 = vrot.slane %v626_v43, 1 }
 0x1bc   : > { %v629_v44 = vmul.f32 0.015625, %v615_v41 }
 0x1bd   : > { %v628_v47 = vadd.f32 %v627_v45, %v626_v43 }
 0x1be   : > { %v631_v46 = vadd.f32 1e-05, %v629_v44 }
 0x1bf   : > { %v630_v48 = vmul.f32 0.015625, %v628_v47 }
 0x1c0   : > { %1567 = vrsqrt.f32 %v631_v46 }
 0x1c1   : > { %v632_v49 = vadd.f32 1e-05, %v630_v48 }
 0x1c3   : > { %1569 = vrsqrt.f32 %v632_v49 }
 0x1ca   : > { %v1568_v59 = vpop.eup %1567 }
 0x1cd   : > { %v1570_v63 = vpop.eup %1569 }
 0x1ce   : > { %v637_v1 = vcombine.low %v1568_v59, %v1570_v63 }
 0x1d0   : > { %v644_v3 = vrot.slane %v637_v1, %v643_v61 }
 0x1d2   : > { %v651_v7 = vrot.slane %v644_v3, %v643_v61 }
 0x1d4   : > { %v653_v13 = vmul.f32 %v651_v7, %v539_v5 }
 0x1d6   : > { %v658_v15 = vrot.slane %v653_v13, %v657_v9  ;;  %v662_v17 = vrot.slane %v653_v13, %v661_v11 }
 0x1d8   : > { %v665_v19 = vmul.f32 %v658_v15, %v2081_v32  ;;  %v666_v20 = vmul.f32 %v662_v17, %v2083_v33  ;;  %v701_v21 = vmul.f32 %v662_v17, %v2078_v18  ;;  %v687_v22 = vmul.f32 %v662_v17, %v2035_v55 }
 0x1d9   : > { %v689_v23 = vmul.f32 %v662_v17, %v2041_v58  ;;  %v686_v24 = vmul.f32 %v658_v15, %v2033_v54  ;;  %v688_v25 = vmul.f32 %v658_v15, %v2037_v56  ;;  %v691_v26 = vmul.f32 %v662_v17, %v2048_v62 }
 0x1da   : > { %v669_v27 = vcombine.low %v665_v19, %v666_v20  ;;  %v693_v32 = vmul.f32 %v662_v17, %v2054_v2  ;;  %v690_v33 = vmul.f32 %v658_v15, %v2045_v60  ;;  %v692_v18 = vmul.f32 %v658_v15, %v2051_v0  ;;  %v541_v2 = vld [vmem:[%s540_s14] ss:$2 sm:$0x3] }
 0x1db   : > { %v695_v55 = vmul.f32 %v662_v17, %v2060_v6  ;;  %v697_v58 = vmul.f32 %v662_v17, %v2066_v10  ;;  %v694_v54 = vmul.f32 %v658_v15, %v2057_v4  ;;  %v696_v56 = vmul.f32 %v658_v15, %v2063_v8  ;;  %v745_v20 = vld [vmem:[#allocation2] sm:$0xff] }
 0x1dc   : > { %v676_v62 = vrot.slane %v669_v27, %v643_v61  ;;  %v699_v28 = vmul.f32 %v662_v17, %v2072_v14  ;;  %v698_v29 = vmul.f32 %v658_v15, %v2069_v12  ;;  %v700_v30 = vmul.f32 %v658_v15, %v2075_v16 }
 0x1de   : > { %v683_v31 = vrot.slane %v676_v62, %v643_v61  ;;  %v751_v62 = vld [vmem:[#allocation2 + $0x30] sm:$0xff] }
 0x1e0   : > { %v685_v60 = vsub.f32 %v541_v2, %v683_v31 }
 0x1e2   : > { %v706_v34 = vrot.slane %v685_v60, %v657_v9  ;;  %v710_v0 = vrot.slane %v685_v60, %v661_v11 }
 0x1e4   : > { %v728_v35 = vadd.f32 %v710_v0, %v701_v21  ;;  %v714_v6 = vadd.f32 %v710_v0, %v687_v22  ;;  %v716_v36 = vadd.f32 %v710_v0, %v689_v23  ;;  %v713_v10 = vadd.f32 %v706_v34, %v686_v24  ;;  %v746_v21 = vld [vmem:[#allocation2 + $0x8] sm:$0xff]  ;;  %v747_v23 = vld [vmem:[#allocation2 + $0x10] sm:$0xff] }
 0x1e5   : > { %v715_v37 = vadd.f32 %v706_v34, %v688_v25  ;;  %v718_v4 = vadd.f32 %v710_v0, %v691_v26  ;;  %v720_v38 = vadd.f32 %v710_v0, %v693_v32  ;;  %v717_v8 = vadd.f32 %v706_v34, %v690_v33  ;;  %v748_v26 = vld [vmem:[#allocation2 + $0x18] sm:$0xff] }
 0x1e6   : > { %v744_v39 = vmax.f32 %v728_v35, 0.0  ;;  %v730_v40 = vmax.f32 %v714_v6, 0.0  ;;  %v732_v14 = vmax.f32 %v716_v36, 0.0  ;;  %v729_v42 = vmax.f32 %v713_v10, 0.0  ;;  %v753_v35 = vld [vmem:[#allocation2 + $0x40] sm:$0xff]  ;;  %v754_v6 = vld [vmem:[#allocation2 + $0x48] sm:$0xff] }
 0x1e7   : > { %v731_v12 = vmax.f32 %v715_v37, 0.0  ;;  %v734_v41 = vmax.f32 %v718_v4, 0.0  ;;  %v736_v16 = vmax.f32 %v720_v38, 0.0  ;;  %v719_v43 = vadd.f32 %v706_v34, %v692_v18  ;;  %v755_v10 = vld [vmem:[#allocation2 + $0x50] sm:$0xff]  ;;  %v756_v38 = vld [vmem:[#allocation2 + $0x58] sm:$0xff] }
 0x1e8   : > { %v762_v44 = vpack.c.bf16 %v732_v14, %v730_v40  ;;  %v733_v45 = vmax.f32 %v717_v8, 0.0  ;;  %v722_v46 = vadd.f32 %v710_v0, %v695_v55  ;;  %v724_v47 = vadd.f32 %v710_v0, %v697_v58  ;;  %v749_v58 = vld [vmem:[#allocation2 + $0x20] sm:$0xff] }
 0x1e9   : > { %v761_v48 = vpack.c.bf16 %v731_v12, %v729_v42  ;;  %v764_v49 = vpack.c.bf16 %v736_v16, %v734_v41  ;;  %v735_v50 = vmax.f32 %v719_v43, 0.0  ;;  %v721_v51 = vadd.f32 %v706_v34, %v694_v54  ;;  %v750_v54 = vld [vmem:[#allocation2 + $0x28] sm:$0xff]  ;;  %v757_v12 = vld [vmem:[#allocation2 + $0x60] sm:$0xff]  ;;  %v759_v43 = vld [vmem:[#allocation2 + $0x70] sm:$0xff] }
 0x1ea   : > { %993 = vmatprep.mubr.bf16.mxu1 %v762_v44  ;;  %v738_v52 = vmax.f32 %v722_v46, 0.0  ;;  %v740_v53 = vmax.f32 %v724_v47, 0.0  ;;  %v723_v57 = vadd.f32 %v706_v34, %v696_v56  ;;  %v726_v59 = vadd.f32 %v710_v0, %v699_v28  ;;  %v758_v41 = vld [vmem:[#allocation2 + $0x68] sm:$0xff]  ;;  %v760_v46 = vld [vmem:[#allocation2 + $0x78] sm:$0xff] }
 0x1eb   : > { %994 = vmatmul.mubr.bf16.vlgmr.msra.gmra.mrb[0].mxu1 %v761_v48  ;;  %v763_v61 = vpack.c.bf16 %v735_v50, %v733_v45  ;;  %v737_v63 = vmax.f32 %v721_v51, 0.0  ;;  %v725_v1 = vadd.f32 %v706_v34, %v698_v29  ;;  %v727_v3 = vadd.f32 %v706_v34, %v700_v30  ;;  %v752_v30 = vld [vmem:[#allocation2 + $0x38] sm:$0xff] }
 0x1ec   : > { %1003 = vmatprep.mubr.bf16.mxu1 %v764_v49  ;;  %v766_v5 = vpack.c.bf16 %v740_v53, %v738_v52  ;;  %v739_v7 = vmax.f32 %v723_v57, 0.0  ;;  %v742_v9 = vmax.f32 %v726_v59, 0.0 }
 0x1ed   : > { %v741_v11 = vmax.f32 %v725_v1, 0.0  ;;  %v743_v13 = vmax.f32 %v727_v3, 0.0 }
 0x1ee   : > { %v765_v15 = vpack.c.bf16 %v739_v7, %v737_v63  ;;  %v768_v17 = vpack.c.bf16 %v744_v39, %v742_v9 }
 0x1ef   : > { %v767_v19 = vpack.c.bf16 %v743_v13, %v741_v11 }
 0x1f3   : > { %1004 = vmatmul.mubr.bf16.gmra.mrb[4].mxu1 %v763_v61 }
 0x1f4   : > { %1013 = vmatprep.mubr.bf16.mxu1 %v766_v5 }
 0x1fb   : > { %1014 = vmatmul.mubr.bf16.gmra.mrb[8].mxu1 %v765_v15 }
 0x1fc   : > { %1023 = vmatprep.mubr.bf16.mxu1 %v768_v17 }
 0x203   : > { %1024 = vmatmul.mubr.bf16.gmra.mrb[12].mxu1 %v767_v19 }
 0x2be   : > { %v995_v22 = vpop.f32.mrb[0].mxu1 }
 0x2bf   : > { %v1034_v24 = vadd.f32 %v995_v22, %v745_v20  ;;  %v997_v25 = vpop.f32.mrb[1].mxu1 }
 0x2c0   : > { %v1035_v27 = vadd.f32 %v997_v25, %v746_v21  ;;  %v999_v32 = vpop.f32.mrb[2].mxu1 }
 0x2c1   : > { %1050 = vst [vmem:[#allocation2] sm:$0xff] %v1034_v24  ;;  %v1036_v33 = vadd.f32 %v999_v32, %v747_v23  ;;  %v1001_v18 = vpop.f32.mrb[3].mxu1 }
 0x2c2   : > { %1051 = vst [vmem:[#allocation2 + $0x8] sm:$0xff] %v1035_v27  ;;  %v1037_v55 = vadd.f32 %v1001_v18, %v748_v26 }
 0x2c3   : > { %1052 = vst [vmem:[#allocation2 + $0x10] sm:$0xff] %v1036_v33 }
 0x2c4   : > { %1053 = vst [vmem:[#allocation2 + $0x18] sm:$0xff] %v1037_v55 }
 0x2c6   : > { %v1005_v56 = vpop.f32.mrb[4].mxu1 }
 0x2c7   : > { %v1038_v28 = vadd.f32 %v1005_v56, %v749_v58  ;;  %v1007_v29 = vpop.f32.mrb[5].mxu1 }
 0x2c8   : > { %v1039_v2 = vadd.f32 %v1007_v29, %v750_v54  ;;  %v1009_v31 = vpop.f32.mrb[6].mxu1  ;;  %v1070_v52 = vld [vmem:[#allocation2] sm:$0xff] (!%p1394_p0) }
 0x2c9   : > { %1054 = vst [vmem:[#allocation2 + $0x20] sm:$0xff] %v1038_v28  ;;  %v1040_v60 = vadd.f32 %v1009_v31, %v751_v62  ;;  %v1011_v34 = vpop.f32.mrb[7].mxu1  ;;  %v1071_v63 = vld [vmem:[#allocation2 + $0x8] sm:$0xff] (!%p1394_p0) }
 0x2ca   : > { %1055 = vst [vmem:[#allocation2 + $0x28] sm:$0xff] %v1039_v2  ;;  %v1041_v0 = vadd.f32 %v1011_v34, %v752_v30  ;;  %v1072_v53 = vld [vmem:[#allocation2 + $0x10] sm:$0xff] (!%p1394_p0) }
 0x2cb   : > { %1056 = vst [vmem:[#allocation2 + $0x30] sm:$0xff] %v1040_v60  ;;  %v1086_v59 = vadd.f32 (!%p1394_p0), %v1072_v53, %v1070_v52  ;;  %v1073_v3 = vld [vmem:[#allocation2 + $0x18] sm:$0xff] (!%p1394_p0) }
 0x2cc   : > { %1057 = vst [vmem:[#allocation2 + $0x38] sm:$0xff] %v1041_v0  ;;  %v1099_v9 = vadd.f32 (!%p1394_p0), %v1073_v3, %v1071_v63 }
 0x2ce   : > { %v1015_v36 = vpop.f32.mrb[8].mxu1 }
 0x2cf   : > { %v1042_v37 = vadd.f32 %v1015_v36, %v753_v35  ;;  %v1017_v4 = vpop.f32.mrb[9].mxu1 }
 0x2d0   : > { %v1043_v8 = vadd.f32 %v1017_v4, %v754_v6  ;;  %v1019_v39 = vpop.f32.mrb[10].mxu1  ;;  %v1074_v57 = vld [vmem:[#allocation2 + $0x20] sm:$0xff] (!%p1394_p0) }
 0x2d1   : > { %1058 = vst [vmem:[#allocation2 + $0x40] sm:$0xff] %v1042_v37  ;;  %v1044_v40 = vadd.f32 %v1019_v39, %v755_v10  ;;  %v1021_v14 = vpop.f32.mrb[11].mxu1  ;;  %v1087_v1 = vadd.f32 (!%p1394_p0), %v1086_v59, %v1074_v57  ;;  %v1075_v5 = vld [vmem:[#allocation2 + $0x28] sm:$0xff] (!%p1394_p0) }
 0x2d2   : > { %1059 = vst [vmem:[#allocation2 + $0x48] sm:$0xff] %v1043_v8  ;;  %v1045_v42 = vadd.f32 %v1021_v14, %v756_v38  ;;  %v1076_v61 = vld [vmem:[#allocation2 + $0x30] sm:$0xff] (!%p1394_p0)  ;;  %v1100_v17 = vadd.f32 (!%p1394_p0), %v1099_v9, %v1075_v5 }
 0x2d3   : > { %1060 = vst [vmem:[#allocation2 + $0x50] sm:$0xff] %v1044_v40  ;;  %v1088_v11 = vadd.f32 (!%p1394_p0), %v1087_v1, %v1076_v61  ;;  %v1077_v13 = vld [vmem:[#allocation2 + $0x38] sm:$0xff] (!%p1394_p0) }
 0x2d4   : > { %1061 = vst [vmem:[#allocation2 + $0x58] sm:$0xff] %v1045_v42  ;;  %v1101_v22 = vadd.f32 (!%p1394_p0), %v1100_v17, %v1077_v13 }
 0x2d6   : > { %v1025_v16 = vpop.f32.mrb[12].mxu1  ;;  %1069 = sbr.rel (%p1394_p0) target bundleno = 810 (0x32a), region = 60 }
 0x2d7   : > { %v1046_v44 = vadd.f32 %v1025_v16, %v757_v12  ;;  %v1027_v45 = vpop.f32.mrb[13].mxu1 }
 0x2d8   : > { %v1047_v47 = vadd.f32 %v1027_v45, %v758_v41  ;;  %v1029_v48 = vpop.f32.mrb[14].mxu1  ;;  %v1078_v7 = vld [vmem:[#allocation2 + $0x40] sm:$0xff] (!%p1394_p0) }
 0x2d9   : > { %1062 = vst [vmem:[#allocation2 + $0x60] sm:$0xff] %v1046_v44  ;;  %v1048_v49 = vadd.f32 %v1029_v48, %v759_v43  ;;  %v1031_v50 = vpop.f32.mrb[15].mxu1  ;;  %v1089_v19 = vadd.f32 (!%p1394_p0), %v1088_v11, %v1078_v7  ;;  %v1079_v20 = vld [vmem:[#allocation2 + $0x48] sm:$0xff] (!%p1394_p0) }
 0x2da   : > { %1063 = vst [vmem:[#allocation2 + $0x68] sm:$0xff] %v1047_v47  ;;  %v1049_v51 = vadd.f32 %v1031_v50, %v760_v46  ;;  %v1080_v15 = vld [vmem:[#allocation2 + $0x50] sm:$0xff] (!%p1394_p0)  ;;  %v1102_v26 = vadd.f32 (!%p1394_p0), %v1101_v22, %v1079_v20 }
 0x2db   : > { %1064 = vst [vmem:[#allocation2 + $0x70] sm:$0xff] %v1048_v49  ;;  %v1090_v23 = vadd.f32 (!%p1394_p0), %v1089_v19, %v1080_v15  ;;  %v1081_v24 = vld [vmem:[#allocation2 + $0x58] sm:$0xff] (!%p1394_p0) }
 0x2dc   : > { %1065 = vst [vmem:[#allocation2 + $0x78] sm:$0xff] %v1049_v51  ;;  %v1103_v33 = vadd.f32 (!%p1394_p0), %v1102_v26, %v1081_v24 }
 0x2e0   : > { %v1082_v21 = vld [vmem:[#allocation2 + $0x60] sm:$0xff] }
 0x2e1   : > { %v1091_v27 = vadd.f32 %v1090_v23, %v1082_v21  ;;  %v1083_v32 = vld [vmem:[#allocation2 + $0x68] sm:$0xff] }
 0x2e2   : > { %v1084_v25 = vld [vmem:[#allocation2 + $0x70] sm:$0xff]  ;;  %v1104_v58 = vadd.f32 %v1103_v33, %v1083_v32 }
 0x2e3   : > { %v1092_v18 = vadd.f32 %v1091_v27, %v1084_v25  ;;  %v1085_v55 = vld [vmem:[#allocation2 + $0x78] sm:$0xff] }
 0x2e4   : > { %v1105_v56 = vadd.f32 %v1104_v58, %v1085_v55 }
 0x2e5   : > { %v1093_v54 = vrot.slane %v1092_v18, 4 }
 0x2e6   : > { %v1106_v28 = vrot.slane %v1105_v56, 4 }
 0x2e7   : > { %v1094_v62 = vadd.f32 %v1093_v54, %v1092_v18 }
 0x2e8   : > { %v1107_v30 = vadd.f32 %v1106_v28, %v1105_v56 }
 0x2e9   : > { %v1095_v29 = vrot.slane %v1094_v62, 2 }
 0x2ea   : > { %v1108_v31 = vrot.slane %v1107_v30, 2 }
 0x2eb   : > { %v1096_v2 = vadd.f32 %v1095_v29, %v1094_v62 }
 0x2ec   : > { %v1109_v34 = vadd.f32 %v1108_v31, %v1107_v30 }
 0x2ed   : > { %v1097_v60 = vrot.slane %v1096_v2, 1 }
 0x2ee   : > { %v1110_v35 = vrot.slane %v1109_v34, 1 }
 0x2ef   : > { %v1098_v0 = vadd.f32 %v1097_v60, %v1096_v2 }
 0x2f0   : > { %v1111_v36 = vadd.f32 %v1110_v35, %v1109_v34 }
 0x2f1   : > { %v1112_v6 = vmul.f32 0.015625, %v1098_v0 }
 0x2f2   : > { %v1113_v16 = vmul.f32 0.015625, %v1111_v36 }
 0x2f3   : > { %v2148_v10 = vsub.f32 %v1070_v52, %v1112_v6  ;;  %v2150_v37 = vsub.f32 %v1072_v53, %v1112_v6  ;;  %v2152_v4 = vsub.f32 %v1074_v57, %v1112_v6  ;;  %v2154_v38 = vsub.f32 %v1076_v61, %v1112_v6 }
 0x2f4   : > { %v2156_v8 = vsub.f32 %v1078_v7, %v1112_v6  ;;  %v2164_v42 = vsub.f32 %v1080_v15, %v1112_v6  ;;  %v1126_v43 = vsub.f32 %v1082_v21, %v1112_v6  ;;  %v2170_v46 = vsub.f32 %v1071_v63, %v1113_v16 }
 0x2f5   : > { %v1130_v39 = vmul.f32 %v2148_v10, %v2148_v10  ;;  %v1132_v40 = vmul.f32 %v2150_v37, %v2150_v37  ;;  %v1134_v14 = vmul.f32 %v2152_v4, %v2152_v4  ;;  %v1136_v12 = vmul.f32 %v2154_v38, %v2154_v38 }
 0x2f6   : > { %v1138_v44 = vmul.f32 %v2156_v8, %v2156_v8  ;;  %v2172_v47 = vsub.f32 %v1073_v3, %v1113_v16  ;;  %v2174_v48 = vsub.f32 %v1075_v5, %v1113_v16  ;;  %v1128_v49 = vsub.f32 %v1084_v25, %v1112_v6 }
 0x2f7   : > { %v1146_v41 = vadd.f32 %v1132_v40, %v1130_v39  ;;  %v1140_v50 = vmul.f32 %v2164_v42, %v2164_v42  ;;  %v2178_v51 = vsub.f32 %v1077_v13, %v1113_v16  ;;  %v2180_v53 = vsub.f32 %v1079_v20, %v1113_v16 }
 0x2f8   : > { %v1131_v57 = vmul.f32 %v2170_v46, %v2170_v46  ;;  %v1133_v59 = vmul.f32 %v2172_v47, %v2172_v47  ;;  %v1142_v61 = vmul.f32 %v1126_v43, %v1126_v43  ;;  %v1135_v63 = vmul.f32 %v2174_v48, %v2174_v48 }
 0x2f9   : > { %v1147_v45 = vadd.f32 %v1146_v41, %v1134_v14  ;;  %v1125_v3 = vsub.f32 %v1081_v24, %v1113_v16  ;;  %v1137_v5 = vmul.f32 %v2178_v51, %v2178_v51  ;;  %v1144_v9 = vmul.f32 %v1128_v49, %v1128_v49 }
 0x2fa   : > { %v1159_v7 = vadd.f32 %v1133_v59, %v1131_v57  ;;  %v1127_v13 = vsub.f32 %v1083_v32, %v1113_v16  ;;  %v1139_v15 = vmul.f32 %v2180_v53, %v2180_v53  ;;  %v1129_v20 = vsub.f32 %v1085_v55, %v1113_v16 }
 0x2fb   : > { %v1148_v52 = vadd.f32 %v1147_v45, %v1136_v12  ;;  %v1141_v21 = vmul.f32 %v1125_v3, %v1125_v3 }
 0x2fc   : > { %v1160_v17 = vadd.f32 %v1159_v7, %v1135_v63  ;;  %v1143_v25 = vmul.f32 %v1127_v13, %v1127_v13  ;;  %v1145_v24 = vmul.f32 %v1129_v20, %v1129_v20 }
 0x2fd   : > { %v1149_v1 = vadd.f32 %v1148_v52, %v1138_v44 }
 0x2fe   : > { %v1161_v22 = vadd.f32 %v1160_v17, %v1137_v5 }
 0x2ff   : > { %v1150_v11 = vadd.f32 %v1149_v1, %v1140_v50 }
 0x300   : > { %v1162_v26 = vadd.f32 %v1161_v22, %v1139_v15 }
 0x301   : > { %v1151_v19 = vadd.f32 %v1150_v11, %v1142_v61 }
 0x302   : > { %v1163_v33 = vadd.f32 %v1162_v26, %v1141_v21 }
 0x303   : > { %v1152_v23 = vadd.f32 %v1151_v19, %v1144_v9 }
 0x304   : > { %v1164_v58 = vadd.f32 %v1163_v33, %v1143_v25 }
 0x305   : > { %v1153_v27 = vrot.slane %v1152_v23, 4 }
 0x306   : > { %v1165_v56 = vadd.f32 %v1164_v58, %v1145_v24 }
 0x307   : > { %v1154_v18 = vadd.f32 %v1153_v27, %v1152_v23 }
 0x308   : > { %v1166_v32 = vrot.slane %v1165_v56, 4 }
 0x309   : > { %v1155_v54 = vrot.slane %v1154_v18, 2 }
 0x30a   : > { %v1167_v29 = vadd.f32 %v1166_v32, %v1165_v56 }
 0x30b   : > { %v1156_v62 = vadd.f32 %v1155_v54, %v1154_v18 }
 0x30c   : > { %v1168_v2 = vrot.slane %v1167_v29, 2 }
 0x30d   : > { %v1157_v28 = vrot.slane %v1156_v62, 1 }
 0x30e   : > { %v1169_v55 = vadd.f32 %v1168_v2, %v1167_v29 }
 0x30f   : > { %v1158_v30 = vadd.f32 %v1157_v28, %v1156_v62 }
 0x310   : > { %v1170_v34 = vrot.slane %v1169_v55, 1 }
 0x311   : > { %v1172_v31 = vmul.f32 0.015625, %v1158_v30 }
 0x312   : > { %v1171_v0 = vadd.f32 %v1170_v34, %v1169_v55 }
 0x313   : > { %v1174_v60 = vadd.f32 1e-05, %v1172_v31 }
 0x314   : > { %v1173_v35 = vmul.f32 0.015625, %v1171_v0 }
 0x315   : > { %1571 = vrsqrt.f32 %v1174_v60 }
 0x316   : > { %v1175_v6 = vadd.f32 1e-05, %v1173_v35 }
 0x318   : > { %1573 = vrsqrt.f32 %v1175_v6 }
 0x31f   : > { %v1572_v36 = vpop.eup %1571 }
 0x320   : > { %v1178_v39 = vmul.f32 %v1572_v36, %v2148_v10  ;;  %v1180_v40 = vmul.f32 %v1572_v36, %v2150_v37  ;;  %v1182_v14 = vmul.f32 %v1572_v36, %v2152_v4  ;;  %v1184_v12 = vmul.f32 %v1572_v36, %v2154_v38 }
 0x321   : > { %v1186_v41 = vmul.f32 %v1572_v36, %v2156_v8  ;;  %v1188_v16 = vmul.f32 %v1572_v36, %v2164_v42  ;;  %v1190_v44 = vmul.f32 %v1572_v36, %v1126_v43  ;;  %v1192_v45 = vmul.f32 %v1572_v36, %v1128_v49 }
 0x322   : > { %1194 = vst [vmem:[#allocation9] sm:$0xff] %v1178_v39  ;;  %1196 = vst [vmem:[#allocation9 + $0x10] sm:$0xff] %v1180_v40  ;;  %v1574_v10 = vpop.eup %1573 }
 0x323   : > { %1198 = vst [vmem:[#allocation9 + $0x20] sm:$0xff] %v1182_v14  ;;  %1200 = vst [vmem:[#allocation9 + $0x30] sm:$0xff] %v1184_v12  ;;  %v1179_v37 = vmul.f32 %v1574_v10, %v2170_v46  ;;  %v1181_v4 = vmul.f32 %v1574_v10, %v2172_v47  ;;  %v1183_v38 = vmul.f32 %v1574_v10, %v2174_v48 }
 0x324   : > { %1202 = vst [vmem:[#allocation9 + $0x40] sm:$0xff] %v1186_v41  ;;  %1204 = vst [vmem:[#allocation9 + $0x50] sm:$0xff] %v1188_v16  ;;  %v1185_v8 = vmul.f32 %v1574_v10, %v2178_v51  ;;  %v1187_v42 = vmul.f32 %v1574_v10, %v2180_v53  ;;  %v1189_v43 = vmul.f32 %v1574_v10, %v1125_v3 }
 0x325   : > { %1206 = vst [vmem:[#allocation9 + $0x60] sm:$0xff] %v1190_v44  ;;  %1208 = vst [vmem:[#allocation9 + $0x70] sm:$0xff] %v1192_v45  ;;  %v1191_v49 = vmul.f32 %v1574_v10, %v1127_v13  ;;  %v1193_v50 = vmul.f32 %v1574_v10, %v1129_v20 }
 0x326   : > { %1195 = vst [vmem:[#allocation9 + $0x8] sm:$0xff] %v1179_v37  ;;  %1197 = vst [vmem:[#allocation9 + $0x18] sm:$0xff] %v1181_v4 }
 0x327   : > { %1199 = vst [vmem:[#allocation9 + $0x28] sm:$0xff] %v1183_v38  ;;  %1201 = vst [vmem:[#allocation9 + $0x38] sm:$0xff] %v1185_v8 }
 0x328   : > { %1203 = vst [vmem:[#allocation9 + $0x48] sm:$0xff] %v1187_v42  ;;  %1205 = vst [vmem:[#allocation9 + $0x58] sm:$0xff] %v1189_v43 }
 0x329   : > { %1207 = vst [vmem:[#allocation9 + $0x68] sm:$0xff] %v1191_v49  ;;  %1209 = vst [vmem:[#allocation9 + $0x78] sm:$0xff] %v1193_v50 }
 0x32a PF: > { %p1429_p5 = scmp.eq.s32.totalorder %s1883_s15, 1  ;;  %s1760_s21 = smov [#allocation9]  }
 0x32b   : > { %s1219_s25 = sshll.u32 %s1760_s21, 4  ;;  %s1220_s25 = int_to_ptr.vmem [resolvable:$true] %s1219_s25 }
 0x32c   : > { %s1663_s10 = scalar_lea.vmem %s1220_s25, 2048  ;;  %p1670_p8 = scmp.lt.s32.totalorder %s1220_s25, %s1220_s25 }
 0x32d   : > { %p1664_p1 = scmp.ne.s32.totalorder %s1220_s25, %s1663_s10  ;;  %p1671_p13 = scmp.lt.s32.totalorder %s1663_s10, %s1663_s10 }
 0x32f   : > { %p1665_p4 = pnand %p1664_p1, %p1429_p5  ;;  %p1672_p2 = por %p1671_p13, %p1670_p8 }
 0x331   : > { %p1666_p7 = pneg %p1665_p4 }
 0x333   : > { %p1673_p3 = pnand %p1672_p2, %p1666_p7 }
 0x335   : > { %1676 = shalt.err (!%p1673_p3)
}
 0x336   : > { %s1677_s28 = scalar_lea.hbm %s2249_s5, 2048 }
 0x337   : > { %p1678_p6 = scmp.ne.s32.totalorder %s2249_s5, %s1677_s28  ;;  %p1683_p10 = scmp.lt.u32.totalorder %s1677_s28, %s2249_s5 }
 0x339   : > { %p1679_p11 = pnand %p1678_p6, %p1429_p5 }
 0x33b   : > { %p1680_p12 = pneg %p1679_p11 }
 0x33d   : > { %p1685_p9 = pnand %p1683_p10, %p1680_p12 }
 0x33f   : > { %1688 = shalt.err (!%p1685_p9)
}
 0x340   : > { %s1761_s6 = smov 256   ;;  %s1762_s8 = smov 16  }
 0x341   : > { %1412 = dma.vmem_to_hbm [thread:$0]  (%p1429_p5), %s1220_s25, 2048, %s2249_s5, [#allocation5], %s1761_s6, %s1761_s6, %s1762_s8  }
 0x342   : > { %1722 = dma.done.wait (%p1429_p5), [#allocation5], 2048  }
 0x343   : > { %1724 = vsyncadd (%p1429_p5), [#allocation5], 4294965248 }
 0x344 PF: > { %s20_s23 = sadd.s32 1, %s1747_s23   ;;  %s2273_s18 = smov %s1731_s19 }
 0x345   : > { %p17_p0 = scmp.ge.s32.totalorder %s20_s23, 4   ;;  %s2274_s19 = smov %s1735_s20 }
 0x346   : > { %s2275_s20 = smov %s1837_s30  ;;  %s2276_s21 = smov %s1743_s22 }
 0x347   : > { %s2277_s22 = smov %s2279_s24  ;;  %19 = sbr.rel (!%p17_p0) target bundleno = 8 (0x8), region = 104 }
 0x34e   :  { %1235 = vsyncpa [#allocation4], 1 }
 0x34f   :  { %1237 = vsyncpa [#allocation4 + $0x1], 1 }
 0x350   :  { %1238 = vsyncpa [#allocation7], 1 }
 0x351   :  { %1240 = vsyncpa [#allocation7 + $0x1], 1 }
 0x352   :  { %1241 = vsyncpa [#allocation5], 1 }
 0x353   :  { %1243 = vsyncpa [#allocation5 + $0x1], 1 }

// kernel: tpu_custom_call.1
= control target key start
LH: loop header
LB: loop body
LE: loop exit
PB: predicated region body
PF: predicated region fallthrough
CT: control target
= control target key end

     0   :  { %s2244_s0 = inlined_call_operand.hbm [shape: bf16[64,128], index: 0, kind: input, shape index: {}]   ;;  %s2245_s1 = inlined_call_operand.hbm [shape: bf16[128,512], index: 1, kind: input, shape index: {}]   ;;  %s2246_s2 = inlined_call_operand.vmem [shape: f32[2,256], index: 2, kind: input, shape index: {}]   ;;  %s2247_s3 = inlined_call_operand.vmem [shape: f32[2,256], index: 3, kind: input, shape index: {}]   ;;  %s2248_s4 = inlined_call_operand.hbm [shape: bf16[512,256], index: 4, kind: input, shape index: {}]   ;;  %s2249_s5 = inlined_call_operand.hbm [shape: f32[64,256], index: 5, kind: output, shape index: {}]  }
   0x1   :  { %2258 = sst [smem:[#allocation13_spill]] %s2245_s1 }
   0x2   :  { %10 = vsyncpa [#allocation4], 0 }
   0x3   :  { %11 = vsyncpa [#allocation7], 0 }
   0x4   :  { %13 = vsyncpa [#allocation7 + $0x1], 0 }
   0x5   :  { %14 = vsyncpa [#allocation5], 0  ;;  %s1793_s18 = smov 0   ;;  %s1795_s19 = smov 0  }
   0x6   :  { %s1797_s20 = smov 0   ;;  %s1799_s21 = smov 0  }
   0x7   :  { %s1801_s22 = smov 0   ;;  %s1803_s23 = smov 0  }
   0x8 LB: > { %s29_s24 = sadd.s32 1, %s1743_s22  ;;  %s60_s25 = sadd.s32 1, %s1735_s20  ;;  %s1747_s23 = sphi %s1803_s23, %s20_s23   ;;  %s1743_s22 = sphi %s1801_s22, %s2277_s22   ;;  %s1739_s21 = sphi %s1799_s21, %s2276_s21   ;;  %s1735_s20 = sphi %s1797_s20, %s2275_s20   ;;  %s1731_s19 = sphi %s1795_s19, %s2274_s19   ;;  %s1727_s18 = sphi %s1793_s18, %s2273_s18  }
   0x9   : > { %p30_p0 = scmp.ge.s32.totalorder %s29_s24, 2  ;;  %p67_p1 = scmp.ne.s32.totalorder %s1735_s20, %s1731_s19 }
   0xa   : > { %p68_p2 = scmp.eq.s32.totalorder %s1747_s23, 0  ;;  %p1427_p4 = scmp.lt.s32.totalorder %s1747_s23, 2 }
   0xb   : > { %s2279_s24 = smov (%p30_p0, %s29_s24), 0  ;;  %s212_s27 = sand.u32 1, %s1747_s23  }
   0xc   : > { %p69_p3 = por %p68_p2, %p67_p1  ;;  %s57_s26 = ssub.s32 %s1743_s22, %s2279_s24 }
   0xd   : > { %p58_p5 = scmp.eq.s32.totalorder %s57_s26, 0  ;;  %s214_s28 = sand.u32 1, %s1735_s20  }
   0xe   : > { %s1399_s29 = sshll.u32 %s1743_s22, 7  ;;  %s1328_s6 = sshll.u32 %s214_s28, 7 }
   0xf   : > { %s1837_s30 = scalar_select %p58_p5, %s1735_s20, %s60_s25  }
  0x10   : > { %s2259_s1 = sld [smem:[#allocation13_spill]]  ;;  %p1846_p6 = pnand %p1427_p4, %p69_p3 }
  0x11   : > { %s216_s11 = scalar_lea.vmem [#allocation6], %s1328_s6  ;;  %s1852_s13 = scalar_lea.sflag [#allocation7], %s212_s27 }
  0x12   : > { %s2260_s10 = scalar_select %p1846_p6, 1, 0 }
  0x13   : > { %s223_s12 = sshll.u32 %s216_s11, 4  ;;  %p2253_p8 = pneg %p1846_p6  ;;  %s1850_s12 = int_to_ptr.vmem [resolvable:$true] %s223_s12 }
  0x16   : > { %s1844_s9 = scalar_lea.hbm %s2259_s1, %s1399_s29  ;;  %s1580_s17 = scalar_lea.hbm %s2259_s1, 4096 }
  0x17   : > { %s1575_s14 = scalar_lea.hbm %s1844_s9, 2048  ;;  %p1581_p11 = scmp.lt.u32.totalorder %s1844_s9, %s2259_s1 }
  0x18   : > { %p1576_p7 = scmp.ne.s32.totalorder %s1844_s9, %s1575_s14  ;;  %p1582_p12 = scmp.lt.u32.totalorder %s1580_s17, %s1575_s14 }
  0x19   : > { %p1584_p0 = scmp.lt.u32.totalorder %s1575_s14, %s1844_s9 }
  0x1a   : > { %p1578_p9 = pnand %p2253_p8, %p1576_p7  ;;  %p1583_p13 = por %p1582_p12, %p1581_p11 }
  0x1c   : > { %p1579_p10 = pneg %p1578_p9  ;;  %p1585_p1 = por %p1584_p0, %p1583_p13 }
  0x1e   : > { %p1586_p2 = pnand %p1585_p1, %p1579_p10 }
  0x20   : > { %1589 = shalt.err (!%p1586_p2)
}
  0x21   : > { %s1590_s27 = scalar_lea.vmem %s1850_s12, 2048  ;;  %s1749_s29 = smov [#allocation6]  }
  0x22   : > { %p1591_p3 = scmp.ne.s32.totalorder %s1850_s12, %s1590_s27  ;;  %s1595_s6 = sshll.u32 %s1749_s29, 4  ;;  %s1596_s6 = int_to_ptr.vmem [resolvable:$false] %s1595_s6 }
  0x23   : > { %s1597_s7 = scalar_lea.vmem %s1596_s6, 4096  ;;  %p1598_p7 = scmp.lt.s32.totalorder %s1850_s12, %s1596_s6 }
  0x24   : > { %p1593_p4 = pnand %p1591_p3, %p2253_p8  ;;  %p1599_p9 = scmp.lt.s32.totalorder %s1597_s7, %s1590_s27 }
  0x26   : > { %p1594_p5 = pneg %p1593_p4  ;;  %p1600_p11 = por %p1599_p9, %p1598_p7 }
  0x28   : > { %p1601_p12 = pnand %p1600_p11, %p1594_p5 }
  0x2a   : > { %1604 = shalt.err (!%p1601_p12)
}
  0x2b   : > { %s1750_s8 = smov 256   ;;  %s2250_s11 = smov 128  }
  0x2c   : > { %s2251_s14 = smov 8   ;;  %s1883_s15 = sadd.s32 4294967295, %s1747_s23  }
  0x2d   : > { %1422 = dma.hbm_to_vmem [thread:$0]  (!%p1846_p6), %s1844_s9, 2048, %s1850_s12, %s1852_s13, %s1750_s8, %s2250_s11, %s2251_s14  }
  0x2e   : > { %p73_p10 = scmp.ne.s32.totalorder %s1731_s19, %s1727_s18  ;;  %p2252_p13 = scmp.eq.s32.totalorder %s1883_s15, 0 }
  0x2f   : > { %p1325_p0 = scmp.ge.s32.totalorder %s1747_s23, 1  ;;  %p180_p1 = scmp.lt.s32.totalorder %s1747_s23, 3 }
  0x30   : > { %p1892_p2 = por %p2252_p13, %p73_p10  ;;  %s1753_s9 = smov [#allocation3]  }
  0x31   : > { %p1896_p3 = pnand %p1325_p0, %p180_p1  ;;  %s192_s12 = sshll.u32 %s1753_s9, 4  ;;  %s1900_s12 = int_to_ptr.vmem [resolvable:$true] %s192_s12 }
  0x32   : > { %s2261_s16 = scalar_select %p1892_p2, 1, 0 }
  0x33   : > { %s2262_s17 = scalar_select %p1896_p3, 1, 0 }
  0x34   : > { %p1415_p4 = pneg %p1896_p3  ;;  %s1331_s18 = sshll.u32 %s214_s28, 8 }
  0x35   : > { %s1401_s25 = sshll.u32 %s1743_s22, 12  ;;  %s237_s7 = scalar_lea.vmem [#allocation8], %s1331_s18 }
  0x36   : > { %p1909_p5 = pnand %p1415_p4, %p2252_p13  ;;  %s1916_s6 = scalar_lea.hbm %s2248_s4, %s1401_s25 }
  0x37   : > { %s247_s8 = sshll.u32 %s237_s7, 4  ;;  %s1605_s28 = scalar_lea.hbm %s2244_s0, 512  ;;  %s1918_s8 = int_to_ptr.vmem [resolvable:$true] %s247_s8 }
  0x38   : > { %p1606_p7 = scmp.ne.s32.totalorder %s2244_s0, %s1605_s28  ;;  %p1607_p9 = pneg %p1909_p5 }
  0x39   : > { %p1612_p10 = scmp.lt.u32.totalorder %s1605_s28, %s2244_s0 }
  0x3a   : > { %p1608_p11 = pnand %p1607_p9, %p1606_p7 }
  0x3c   : > { %p1609_p12 = pneg %p1608_p11 }
  0x3e   : > { %p1614_p0 = pnand %p1612_p10, %p1609_p12 }
  0x40   : > { %1617 = shalt.err (!%p1614_p0)
}
  0x41   : > { %s1618_s18 = scalar_lea.vmem %s1900_s12, 512  ;;  %p1626_p8 = scmp.lt.s32.totalorder %s1900_s12, %s1900_s12 }
  0x42   : > { %p1619_p1 = scmp.ne.s32.totalorder %s1900_s12, %s1618_s18  ;;  %p1627_p2 = scmp.lt.s32.totalorder %s1618_s18, %s1618_s18 }
  0x44   : > { %p1621_p4 = pnand %p1619_p1, %p1607_p9  ;;  %p1628_p3 = por %p1627_p2, %p1626_p8 }
  0x46   : > { %p1622_p13 = pneg %p1621_p4 }
  0x48   : > { %p1629_p6 = pnand %p1628_p3, %p1622_p13 }
  0x4a   : > { %1632 = shalt.err (!%p1629_p6)
}
  0x4b   : > { %s1754_s1 = smov 64   ;;  %s1755_s11 = smov 4  }
  0x4c   : > { %1418 = dma.hbm_to_vmem [thread:$0]  (!%p1909_p5), %s2244_s0, 512, %s1900_s12, [#allocation4], %s1754_s1, %s1754_s1, %s1755_s11  }
  0x4d   : > { %s1633_s7 = scalar_lea.hbm %s1916_s6, 4096  ;;  %p2264_p9 = scmp.ne.s32.totalorder %s2260_s10, 0 }
  0x4e   : > { %p1634_p7 = scmp.ne.s32.totalorder %s1916_s6, %s1633_s7  ;;  %s1638_s27 = scalar_lea.hbm %s2248_s4, 8192 }
  0x4f   : > { %p2265_p8 = pneg %p2264_p9  ;;  %p1639_p2 = scmp.lt.u32.totalorder %s1916_s6, %s2248_s4 }
  0x50   : > { %p1640_p3 = scmp.lt.u32.totalorder %s1638_s27, %s1633_s7  ;;  %p1642_p12 = scmp.lt.u32.totalorder %s1633_s7, %s1916_s6 }
  0x51   : > { %p1636_p13 = pnand %p1634_p7, %p2265_p8 }
  0x52   : > { %p1641_p11 = por %p1640_p3, %p1639_p2 }
  0x53   : > { %p1637_p6 = pneg %p1636_p13 }
  0x54   : > { %p1643_p10 = por %p1642_p12, %p1641_p11 }
  0x56   : > { %p1644_p0 = pnand %p1643_p10, %p1637_p6 }
  0x58   : > { %1647 = shalt.err (!%p1644_p0)
}
  0x59   : > { %s1648_s12 = scalar_lea.vmem %s1918_s8, 4096  ;;  %p2266_p1 = pmov %p2265_p8 }
  0x5a   : > { %p1649_p5 = scmp.ne.s32.totalorder %s1918_s8, %s1648_s12  ;;  %s1756_s26 = smov [#allocation8]  }
  0x5b   : > { %s1653_s1 = sshll.u32 %s1756_s26, 4  ;;  %s1654_s1 = int_to_ptr.vmem [resolvable:$false] %s1653_s1 }
  0x5c   : > { %p1651_p4 = pnand %p1649_p5, %p2266_p1  ;;  %s1655_s11 = scalar_lea.vmem %s1654_s1, 8192 }
  0x5d   : > { %p1656_p8 = scmp.lt.s32.totalorder %s1918_s8, %s1654_s1  ;;  %p1657_p13 = scmp.lt.s32.totalorder %s1655_s11, %s1648_s12 }
  0x5e   : > { %p1652_p7 = pneg %p1651_p4 }
  0x5f   : > { %p1658_p2 = por %p1657_p13, %p1656_p8 }
  0x61   : > { %p1659_p3 = pnand %p1658_p2, %p1652_p7 }
  0x63   : > { %1662 = shalt.err (!%p1659_p3)
}
  0x64   : > { %s2267_s14 = smov 8   ;;  %s2268_s25 = smov 128  }
  0x65   : > { %1425 = dma.hbm_to_vmem [thread:$0]  (!%p2264_p9), %s1916_s6, 4096, %s1918_s8, %s1852_s13, %s2268_s25, %s2268_s25, %s2267_s14  }
  0x66   : > { %p2269_p6 = scmp.ne.s32.totalorder %s2262_s17, 0 }
  0x67   : > { %p2270_p11 = scmp.eq.s32.totalorder (!%p2269_p6), %s1883_s15, 0 }
  0x68   : > { %259 = sbr.rel (%p2269_p6) target bundleno = 836 (0x344), region = 40 }
  0x6f   : > { %1714 = dma.done.wait (%p2270_p11), [#allocation4], 512   ;;  %p2271_p12 = pmov %p2270_p11 }
  0x70   : > { %s265_s10 = sand.u32 1, %s1883_s15   ;;  %s267_s7 = sand.u32 1, %s1731_s19  }
  0x71   : > { %1716 = vsyncadd (%p2271_p12), [#allocation4], 4294966784  ;;  %s1337_s9 = sshll.u32 %s267_s7, 7  ;;  %s266_s28 = scalar_lea.sflag [#allocation7], %s265_s10 }
  0x72   : > { %s1976_s27 = scalar_lea.vmem [#allocation6], %s1337_s9  ;;  %p2272_p10 = scmp.ne.s32.totalorder %s2261_s16, 0 }
  0x74   : > { %1718 = dma.done.wait (%p2272_p10), %s266_s28, 6144  }
  0x75   : > { %1720 = vsyncadd (%p2272_p10), %s266_s28, 4294961152  ;;  %s1338_s13 = sshll.u32 %s267_s7, 8  ;;  %p1339_p9 = scmp.ne.s32.totalorder %s1739_s21, 0 }
  0x76   : > { %s1982_s17 = scalar_lea.vmem [#allocation8], %s1338_s13  ;;  %v1757_v0 = vmov (!%p1339_p9), 0.0  }
  0x77   : > { %313 = sbr.rel (%p1339_p9) target bundleno = 127 (0x7f), region = 56  ;;  %314 = vst [vmem:[#allocation2] sm:$0xff] (!%p1339_p9), %v1757_v0  ;;  %315 = vst [vmem:[#allocation2 + $0x8] sm:$0xff] (!%p1339_p9), %v1757_v0 }
  0x78   : > { %316 = vst [vmem:[#allocation2 + $0x10] sm:$0xff] (!%p1339_p9), %v1757_v0  ;;  %317 = vst [vmem:[#allocation2 + $0x18] sm:$0xff] (!%p1339_p9), %v1757_v0 }
  0x79   : > { %318 = vst [vmem:[#allocation2 + $0x20] sm:$0xff] (!%p1339_p9), %v1757_v0  ;;  %319 = vst [vmem:[#allocation2 + $0x28] sm:$0xff] (!%p1339_p9), %v1757_v0 }
  0x7a   : > { %320 = vst [vmem:[#allocation2 + $0x30] sm:$0xff] (!%p1339_p9), %v1757_v0  ;;  %321 = vst [vmem:[#allocation2 + $0x38] sm:$0xff] (!%p1339_p9), %v1757_v0 }
  0x7b   : > { %322 = vst [vmem:[#allocation2 + $0x40] sm:$0xff] (!%p1339_p9), %v1757_v0  ;;  %323 = vst [vmem:[#allocation2 + $0x48] sm:$0xff] (!%p1339_p9), %v1757_v0 }
  0x7c   : > { %324 = vst [vmem:[#allocation2 + $0x50] sm:$0xff] (!%p1339_p9), %v1757_v0  ;;  %325 = vst [vmem:[#allocation2 + $0x58] sm:$0xff] (!%p1339_p9), %v1757_v0 }
  0x7d   : > { %326 = vst [vmem:[#allocation2 + $0x60] sm:$0xff] (!%p1339_p9), %v1757_v0  ;;  %327 = vst [vmem:[#allocation2 + $0x68] sm:$0xff] (!%p1339_p9), %v1757_v0 }
  0x7e   : > { %328 = vst [vmem:[#allocation2 + $0x70] sm:$0xff] %v1757_v0  ;;  %329 = vst [vmem:[#allocation2 + $0x78] sm:$0xff] %v1757_v0 }
  0x7f PF: > { %v1491_v1 = vld [vmem:[%s1976_s27 + $0x4] ss:$8 sps:$4 sm:$0xff]   ;;  %v1493_v2 = vld [vmem:[%s1976_s27] ss:$8 sps:$4 sm:$0xff]   ;;  %v1758_v3 = vmov 0   ;;  %v1517_v20 = vld [vmem:[#allocation3 + $0x10] sm:$0xff]  }
  0x80   : > { %490 = vmatprep.mubr.bf16.mxu0 %v1758_v3  ;;  %458 = vmatprep.subr.bf16.mxu0 %v1491_v1  ;;  %v1494_v4 = vld [vmem:[%s1976_s27 + $0x14] ss:$8 sps:$4 sm:$0xff]   ;;  %v1496_v5 = vld [vmem:[%s1976_s27 + $0x10] ss:$8 sps:$4 sm:$0xff]   ;;  %v1497_v6 = vld [vmem:[%s1976_s27 + $0x24] ss:$8 sps:$4 sm:$0xff]  }
  0x81   : > { %459 = vmatpush1.bf16.msra.mxu0 %v1493_v2  ;;  %v1499_v7 = vld [vmem:[%s1976_s27 + $0x20] ss:$8 sps:$4 sm:$0xff]   ;;  %v1500_v8 = vld [vmem:[%s1976_s27 + $0x34] ss:$8 sps:$4 sm:$0xff]   ;;  %v1502_v9 = vld [vmem:[%s1976_s27 + $0x30] ss:$8 sps:$4 sm:$0xff]  }
  0x82   : > { %460 = vmatprep.subr.bf16.mxu0 %v1494_v4  ;;  %v1503_v10 = vld [vmem:[%s1976_s27 + $0x44] ss:$8 sps:$4 sm:$0xff]   ;;  %v1505_v11 = vld [vmem:[%s1976_s27 + $0x40] ss:$8 sps:$4 sm:$0xff]   ;;  %v1506_v12 = vld [vmem:[%s1976_s27 + $0x54] ss:$8 sps:$4 sm:$0xff]  }
  0x83   : > { %v1508_v13 = vld [vmem:[%s1976_s27 + $0x50] ss:$8 sps:$4 sm:$0xff]   ;;  %v1509_v14 = vld [vmem:[%s1976_s27 + $0x64] ss:$8 sps:$4 sm:$0xff]   ;;  %v1511_v15 = vld [vmem:[%s1976_s27 + $0x60] ss:$8 sps:$4 sm:$0xff]  }
  0x84   : > { %v1512_v16 = vld [vmem:[%s1976_s27 + $0x74] ss:$8 sps:$4 sm:$0xff]   ;;  %v1514_v17 = vld [vmem:[%s1976_s27 + $0x70] ss:$8 sps:$4 sm:$0xff]   ;;  %v1515_v18 = vld [vmem:[#allocation3] sm:$0xff]   ;;  %s531_s16 = sshra.s32 %s1739_s21, 1 }
  0x85   : > { %461 = vmatpush1.bf16.msra.mxu0 %v1496_v5  ;;  %v1516_v19 = vld [vmem:[#allocation3 + $0x8] sm:$0xff]   ;;  %v1518_v21 = vld [vmem:[#allocation3 + $0x18] sm:$0xff]   ;;  %s534_s6 = sand.u32 1, %s1739_s21  ;;  %s1402_s8 = sshll.u32 %s531_s16, 2 }
  0x86   : > { %462 = vmatprep.subr.bf16.mxu0 %v1497_v6  ;;  %v1519_v22 = vld [vmem:[%s1982_s17 + $0x4] ss:$8 sps:$4 sm:$0xff]   ;;  %v1521_v23 = vld [vmem:[%s1982_s17] ss:$8 sps:$4 sm:$0xff]   ;;  %v1522_v24 = vld [vmem:[%s1982_s17 + $0x14] ss:$8 sps:$4 sm:$0xff]   ;;  %s2119_s29 = sadd.s32 %s1402_s8, %s534_s6 }
  0x87   : > { %961 = vmatprep.subr.bf16.mxu1 %v1519_v22  ;;  %v1524_v25 = vld [vmem:[%s1982_s17 + $0x10] ss:$8 sps:$4 sm:$0xff]   ;;  %v1525_v26 = vld [vmem:[%s1982_s17 + $0x24] ss:$8 sps:$4 sm:$0xff]   ;;  %v1527_v27 = vld [vmem:[%s1982_s17 + $0x20] ss:$8 sps:$4 sm:$0xff]   ;;  %s538_s26 = scalar_lea.vmem %s2246_s2, %s2119_s29  ;;  %s540_s14 = scalar_lea.vmem %s2247_s3, %s2119_s29 }
  0x88   : > { %962 = vmatpush1.bf16.msra.mxu1 %v1521_v23  ;;  %v1528_v28 = vld [vmem:[%s1982_s17 + $0x34] ss:$8 sps:$4 sm:$0xff]   ;;  %v1530_v29 = vld [vmem:[%s1982_s17 + $0x30] ss:$8 sps:$4 sm:$0xff]   ;;  %v1531_v30 = vld [vmem:[%s1982_s17 + $0x44] ss:$8 sps:$4 sm:$0xff]  }
  0x89   : > { %463 = vmatpush1.bf16.msra.mxu0 %v1499_v7  ;;  %963 = vmatprep.subr.bf16.mxu1 %v1522_v24  ;;  %v1533_v31 = vld [vmem:[%s1982_s17 + $0x40] ss:$8 sps:$4 sm:$0xff]   ;;  %v1534_v32 = vld [vmem:[%s1982_s17 + $0x54] ss:$8 sps:$4 sm:$0xff]   ;;  %v1536_v33 = vld [vmem:[%s1982_s17 + $0x50] ss:$8 sps:$4 sm:$0xff]  }
  0x8a   : > { %464 = vmatprep.subr.bf16.mxu0 %v1500_v8  ;;  %v1537_v34 = vld [vmem:[%s1982_s17 + $0x64] ss:$8 sps:$4 sm:$0xff]   ;;  %v1539_v35 = vld [vmem:[%s1982_s17 + $0x60] ss:$8 sps:$4 sm:$0xff]   ;;  %v1540_v36 = vld [vmem:[%s1982_s17 + $0x74] ss:$8 sps:$4 sm:$0xff]  }
  0x8b   : > { %v1542_v37 = vld [vmem:[%s1982_s17 + $0x70] ss:$8 sps:$4 sm:$0xff]   ;;  %v1543_v38 = vld [vmem:[%s1982_s17 + $0x84] ss:$8 sps:$4 sm:$0xff]   ;;  %v1545_v39 = vld [vmem:[%s1982_s17 + $0x80] ss:$8 sps:$4 sm:$0xff]  }
  0x8c   : > { %964 = vmatpush1.bf16.msra.mxu1 %v1524_v25  ;;  %v1546_v40 = vld [vmem:[%s1982_s17 + $0x94] ss:$8 sps:$4 sm:$0xff]   ;;  %v1548_v41 = vld [vmem:[%s1982_s17 + $0x90] ss:$8 sps:$4 sm:$0xff]   ;;  %v1549_v42 = vld [vmem:[%s1982_s17 + $0xa4] ss:$8 sps:$4 sm:$0xff]  }
  0x8d   : > { %465 = vmatpush1.bf16.msra.mxu0 %v1502_v9  ;;  %965 = vmatprep.subr.bf16.mxu1 %v1525_v26  ;;  %v1551_v43 = vld [vmem:[%s1982_s17 + $0xa0] ss:$8 sps:$4 sm:$0xff]   ;;  %v1552_v44 = vld [vmem:[%s1982_s17 + $0xb4] ss:$8 sps:$4 sm:$0xff]   ;;  %v1554_v45 = vld [vmem:[%s1982_s17 + $0xb0] ss:$8 sps:$4 sm:$0xff]  }
  0x8e   : > { %466 = vmatprep.subr.bf16.mxu0 %v1503_v10  ;;  %v1555_v46 = vld [vmem:[%s1982_s17 + $0xc4] ss:$8 sps:$4 sm:$0xff]   ;;  %v1557_v47 = vld [vmem:[%s1982_s17 + $0xc0] ss:$8 sps:$4 sm:$0xff]   ;;  %v1558_v48 = vld [vmem:[%s1982_s17 + $0xd4] ss:$8 sps:$4 sm:$0xff]  }
  0x8f   : > { %v1560_v49 = vld [vmem:[%s1982_s17 + $0xd0] ss:$8 sps:$4 sm:$0xff]   ;;  %v1561_v50 = vld [vmem:[%s1982_s17 + $0xe4] ss:$8 sps:$4 sm:$0xff]   ;;  %v1563_v51 = vld [vmem:[%s1982_s17 + $0xe0] ss:$8 sps:$4 sm:$0xff]  }
  0x90   : > { %966 = vmatpush1.bf16.msra.mxu1 %v1527_v27  ;;  %v1564_v52 = vld [vmem:[%s1982_s17 + $0xf4] ss:$8 sps:$4 sm:$0xff]   ;;  %v1566_v53 = vld [vmem:[%s1982_s17 + $0xf0] ss:$8 sps:$4 sm:$0xff]   ;;  %p1394_p0 = scmp.ne.s32.totalorder %s1739_s21, 1 }
  0x91   : > { %467 = vmatpush1.bf16.msra.mxu0 %v1505_v11  ;;  %967 = vmatprep.subr.bf16.mxu1 %v1528_v28 }
  0x92   : > { %468 = vmatprep.subr.bf16.mxu0 %v1506_v12 }
  0x94   : > { %968 = vmatpush1.bf16.msra.mxu1 %v1530_v29 }
  0x95   : > { %469 = vmatpush1.bf16.msra.mxu0 %v1508_v13  ;;  %969 = vmatprep.subr.bf16.mxu1 %v1531_v30 }
  0x96   : > { %470 = vmatprep.subr.bf16.mxu0 %v1509_v14 }
  0x98   : > { %970 = vmatpush1.bf16.msra.mxu1 %v1533_v31 }
  0x99   : > { %471 = vmatpush1.bf16.msra.mxu0 %v1511_v15  ;;  %971 = vmatprep.subr.bf16.mxu1 %v1534_v32 }
  0x9a   : > { %472 = vmatprep.subr.bf16.mxu0 %v1512_v16 }
  0x9c   : > { %972 = vmatpush1.bf16.msra.mxu1 %v1536_v33 }
  0x9d   : > { %473 = vmatpush1.bf16.msra.mxu0 %v1514_v17  ;;  %973 = vmatprep.subr.bf16.mxu1 %v1537_v34 }
  0xa0   : > { %491 = vmatmul.mubr.bf16.vlgmr.msra.gmra.mrb[0].mxu0 %v1515_v18  ;;  %974 = vmatpush1.bf16.msra.mxu1 %v1539_v35 }
  0xa1   : > { %500 = vmatprep.mubr.bf16.mxu0 %v1758_v3  ;;  %975 = vmatprep.subr.bf16.mxu1 %v1540_v36 }
  0xa4   : > { %976 = vmatpush1.bf16.msra.mxu1 %v1542_v37 }
  0xa5   : > { %977 = vmatprep.subr.bf16.mxu1 %v1543_v38 }
  0xa8   : > { %501 = vmatmul.mubr.bf16.gmra.mrb[4].mxu0 %v1516_v19  ;;  %978 = vmatpush1.bf16.msra.mxu1 %v1545_v39 }
  0xa9   : > { %510 = vmatprep.mubr.bf16.mxu0 %v1758_v3  ;;  %979 = vmatprep.subr.bf16.mxu1 %v1546_v40 }
  0xac   : > { %980 = vmatpush1.bf16.msra.mxu1 %v1548_v41 }
  0xad   : > { %981 = vmatprep.subr.bf16.mxu1 %v1549_v42 }
  0xb0   : > { %511 = vmatmul.mubr.bf16.gmra.mrb[8].mxu0 %v1517_v20  ;;  %982 = vmatpush1.bf16.msra.mxu1 %v1551_v43 }
  0xb1   : > { %520 = vmatprep.mubr.bf16.mxu0 %v1758_v3  ;;  %983 = vmatprep.subr.bf16.mxu1 %v1552_v44 }
  0xb4   : > { %984 = vmatpush1.bf16.msra.mxu1 %v1554_v45 }
  0xb5   : > { %985 = vmatprep.subr.bf16.mxu1 %v1555_v46 }
  0xb8   : > { %521 = vmatmul.mubr.bf16.gmra.mrb[12].mxu0 %v1518_v21  ;;  %986 = vmatpush1.bf16.msra.mxu1 %v1557_v47 }
  0xb9   : > { %987 = vmatprep.subr.bf16.mxu1 %v1558_v48 }
  0xbc   : > { %988 = vmatpush1.bf16.msra.mxu1 %v1560_v49 }
  0xbd   : > { %989 = vmatprep.subr.bf16.mxu1 %v1561_v50 }
  0xc0   : > { %990 = vmatpush1.bf16.msra.mxu1 %v1563_v51 }
  0xc1   : > { %991 = vmatprep.subr.bf16.mxu1 %v1564_v52 }
  0xc4   : > { %992 = vmatpush1.bf16.msra.mxu1 %v1566_v53 }
 0x173   : > { %v2033_v54 = vpop.f32.mrb[0].mxu0 }
 0x174   : > { %v2035_v55 = vpop.f32.mrb[1].mxu0 }
 0x175   : > { %v2037_v56 = vpop.f32.mrb[2].mxu0 }
 0x176   : > { %v542_v57 = vadd.f32 %v2037_v56, %v2033_v54  ;;  %v2041_v58 = vpop.f32.mrb[3].mxu0 }
 0x177   : > { %v555_v59 = vadd.f32 %v2041_v58, %v2035_v55 }
 0x17b   : > { %v2045_v60 = vpop.f32.mrb[4].mxu0 }
 0x17c   : > { %v543_v61 = vadd.f32 %v542_v57, %v2045_v60  ;;  %v2048_v62 = vpop.f32.mrb[5].mxu0 }
 0x17d   : > { %v556_v63 = vadd.f32 %v555_v59, %v2048_v62  ;;  %v2051_v0 = vpop.f32.mrb[6].mxu0 }
 0x17e   : > { %v544_v1 = vadd.f32 %v543_v61, %v2051_v0  ;;  %v2054_v2 = vpop.f32.mrb[7].mxu0 }
 0x17f   : > { %v557_v3 = vadd.f32 %v556_v63, %v2054_v2 }
 0x183   : > { %v2057_v4 = vpop.f32.mrb[8].mxu0 }
 0x184   : > { %v545_v5 = vadd.f32 %v544_v1, %v2057_v4  ;;  %v2060_v6 = vpop.f32.mrb[9].mxu0 }
 0x185   : > { %v558_v7 = vadd.f32 %v557_v3, %v2060_v6  ;;  %v2063_v8 = vpop.f32.mrb[10].mxu0 }
 0x186   : > { %v546_v9 = vadd.f32 %v545_v5, %v2063_v8  ;;  %v2066_v10 = vpop.f32.mrb[11].mxu0 }
 0x187   : > { %v559_v11 = vadd.f32 %v558_v7, %v2066_v10 }
 0x18b   : > { %v2069_v12 = vpop.f32.mrb[12].mxu0 }
 0x18c   : > { %v547_v13 = vadd.f32 %v546_v9, %v2069_v12  ;;  %v2072_v14 = vpop.f32.mrb[13].mxu0 }
 0x18d   : > { %v560_v15 = vadd.f32 %v559_v11, %v2072_v14  ;;  %v2075_v16 = vpop.f32.mrb[14].mxu0 }
 0x18e   : > { %v548_v17 = vadd.f32 %v547_v13, %v2075_v16  ;;  %v2078_v18 = vpop.f32.mrb[15].mxu0 }
 0x18f   : > { %v561_v19 = vadd.f32 %v560_v15, %v2078_v18 }
 0x190   : > { %v549_v20 = vrot.slane %v548_v17, 4 }
 0x191   : > { %v562_v21 = vrot.slane %v561_v19, 4 }
 0x192   : > { %v550_v22 = vadd.f32 %v549_v20, %v548_v17 }
 0x193   : > { %v563_v23 = vadd.f32 %v562_v21, %v561_v19 }
 0x194   : > { %v551_v24 = vrot.slane %v550_v22, 2 }
 0x195   : > { %v564_v25 = vrot.slane %v563_v23, 2 }
 0x196   : > { %v552_v26 = vadd.f32 %v551_v24, %v550_v22 }
 0x197   : > { %v565_v27 = vadd.f32 %v564_v25, %v563_v23 }
 0x198   : > { %v553_v28 = vrot.slane %v552_v26, 1 }
 0x199   : > { %v566_v29 = vrot.slane %v565_v27, 1 }
 0x19a   : > { %v554_v30 = vadd.f32 %v553_v28, %v552_v26 }
 0x19b   : > { %v567_v31 = vadd.f32 %v566_v29, %v565_v27 }
 0x19c   : > { %v2081_v32 = vmul.f32 0.015625, %v554_v30 }
 0x19d   : > { %v2083_v33 = vmul.f32 0.015625, %v567_v31 }
 0x19e   : > { %v571_v34 = vsub.f32 %v2033_v54, %v2081_v32  ;;  %v573_v35 = vsub.f32 %v2037_v56, %v2081_v32  ;;  %v575_v36 = vsub.f32 %v2045_v60, %v2081_v32  ;;  %v577_v37 = vsub.f32 %v2051_v0, %v2081_v32 }
 0x19f   : > { %v579_v38 = vsub.f32 %v2057_v4, %v2081_v32  ;;  %v581_v39 = vsub.f32 %v2063_v8, %v2081_v32  ;;  %v583_v40 = vsub.f32 %v2069_v12, %v2081_v32  ;;  %v585_v41 = vsub.f32 %v2075_v16, %v2081_v32 }
 0x1a0   : > { %v587_v42 = vmul.f32 %v571_v34, %v571_v34  ;;  %v589_v43 = vmul.f32 %v573_v35, %v573_v35  ;;  %v591_v44 = vmul.f32 %v575_v36, %v575_v36  ;;  %v593_v45 = vmul.f32 %v577_v37, %v577_v37 }
 0x1a1   : > { %v572_v47 = vsub.f32 %v2035_v55, %v2083_v33  ;;  %v574_v48 = vsub.f32 %v2041_v58, %v2083_v33  ;;  %v576_v49 = vsub.f32 %v2048_v62, %v2083_v33  ;;  %v578_v50 = vsub.f32 %v2054_v2, %v2083_v33 }
 0x1a2   : > { %v603_v46 = vadd.f32 %v589_v43, %v587_v42  ;;  %v580_v51 = vsub.f32 %v2060_v6, %v2083_v33  ;;  %v582_v52 = vsub.f32 %v2066_v10, %v2083_v33  ;;  %v584_v53 = vsub.f32 %v2072_v14, %v2083_v33 }
 0x1a3   : > { %v586_v59 = vsub.f32 %v2078_v18, %v2083_v33  ;;  %v588_v61 = vmul.f32 %v572_v47, %v572_v47  ;;  %v590_v63 = vmul.f32 %v574_v48, %v574_v48  ;;  %v595_v1 = vmul.f32 %v579_v38, %v579_v38 }
 0x1a4   : > { %v604_v57 = vadd.f32 %v603_v46, %v591_v44  ;;  %v592_v5 = vmul.f32 %v576_v49, %v576_v49  ;;  %v597_v9 = vmul.f32 %v581_v39, %v581_v39  ;;  %v594_v13 = vmul.f32 %v578_v50, %v578_v50 }
 0x1a5   : > { %v616_v7 = vadd.f32 %v590_v63, %v588_v61  ;;  %v599_v17 = vmul.f32 %v583_v40, %v583_v40  ;;  %v596_v20 = vmul.f32 %v580_v51, %v580_v51  ;;  %v601_v22 = vmul.f32 %v585_v41, %v585_v41 }
 0x1a6   : > { %v605_v3 = vadd.f32 %v604_v57, %v593_v45  ;;  %v598_v24 = vmul.f32 %v582_v52, %v582_v52  ;;  %v600_v27 = vmul.f32 %v584_v53, %v584_v53  ;;  %v602_v30 = vmul.f32 %v586_v59, %v586_v59 }
 0x1a7   : > { %v617_v15 = vadd.f32 %v616_v7, %v592_v5  ;;  %v1759_v50 = vmov 1966171168   ;;  %v641_v52 = vlaneseq  ;;  %v539_v5 = vld [vmem:[%s538_s26] ss:$2 sm:$0x3] }
 0x1a8   : > { %v606_v11 = vadd.f32 %v605_v3, %v595_v1  ;;  %v639_v51 = vunpack.c.l.s4 %v1759_v50 }
 0x1a9   : > { %v618_v21 = vadd.f32 %v617_v15, %v594_v13  ;;  %v642_v57 = vshrl.u32 %v641_v52, 7 }
 0x1aa   : > { %v607_v19 = vadd.f32 %v606_v11, %v597_v9  ;;  %v640_v53 = vunpack.c.0.s8 %v639_v51 }
 0x1ab   : > { %v619_v25 = vadd.f32 %v618_v21, %v596_v20  ;;  %v657_v9 = vsub.s32 0, %v642_v57  ;;  %v661_v11 = vsub.s32 1, %v642_v57 }
 0x1ac   : > { %v608_v23 = vadd.f32 %v607_v19, %v599_v17  ;;  %v643_v61 = vsub.s32 %v640_v53, %v642_v57 }
 0x1ad   : > { %v620_v28 = vadd.f32 %v619_v25, %v598_v24 }
 0x1ae   : > { %v609_v26 = vadd.f32 %v608_v23, %v601_v22 }
 0x1af   : > { %v621_v31 = vadd.f32 %v620_v28, %v600_v27 }
 0x1b0   : > { %v610_v29 = vrot.slane %v609_v26, 4 }
 0x1b1   : > { %v622_v35 = vadd.f32 %v621_v31, %v602_v30 }
 0x1b2   : > { %v611_v34 = vadd.f32 %v610_v29, %v609_v26 }
 0x1b3   : > { %v623_v37 = vrot.slane %v622_v35, 4 }
 0x1b4   : > { %v612_v36 = vrot.slane %v611_v34, 2 }
 0x1b5   : > { %v624_v39 = vadd.f32 %v623_v37, %v622_v35 }
 0x1b6   : > { %v613_v38 = vadd.f32 %v612_v36, %v611_v34 }
 0x1b7   : > { %v625_v42 = vrot.slane %v624_v39, 2 }
 0x1b8   : > { %v614_v40 = vrot.slane %v613_v38, 1 }
 0x1b9   : > { %v626_v43 = vadd.f32 %v625_v42, %v624_v39 }
 0x1ba   : > { %v615_v41 = vadd.f32 %v614_v40, %v613_v38 }
 0x1bb   : > { %v627_v45 = vrot.slane %v626_v43, 1 }
 0x1bc   : > { %v629_v44 = vmul.f32 0.015625, %v615_v41 }
 0x1bd   : > { %v628_v47 = vadd.f32 %v627_v45, %v626_v43 }
 0x1be   : > { %v631_v46 = vadd.f32 1e-05, %v629_v44 }
 0x1bf   : > { %v630_v48 = vmul.f32 0.015625, %v628_v47 }
 0x1c0   : > { %1567 = vrsqrt.f32 %v631_v46 }
 0x1c1   : > { %v632_v49 = vadd.f32 1e-05, %v630_v48 }
 0x1c3   : > { %1569 = vrsqrt.f32 %v632_v49 }
 0x1ca   : > { %v1568_v59 = vpop.eup %1567 }
 0x1cd   : > { %v1570_v63 = vpop.eup %1569 }
 0x1ce   : > { %v637_v1 = vcombine.low %v1568_v59, %v1570_v63 }
 0x1d0   : > { %v644_v3 = vrot.slane %v637_v1, %v643_v61 }
 0x1d2   : > { %v651_v7 = vrot.slane %v644_v3, %v643_v61 }
 0x1d4   : > { %v653_v13 = vmul.f32 %v651_v7, %v539_v5 }
 0x1d6   : > { %v658_v15 = vrot.slane %v653_v13, %v657_v9  ;;  %v662_v17 = vrot.slane %v653_v13, %v661_v11 }
 0x1d8   : > { %v665_v19 = vmul.f32 %v658_v15, %v2081_v32  ;;  %v666_v20 = vmul.f32 %v662_v17, %v2083_v33  ;;  %v701_v21 = vmul.f32 %v662_v17, %v2078_v18  ;;  %v687_v22 = vmul.f32 %v662_v17, %v2035_v55 }
 0x1d9   : > { %v689_v23 = vmul.f32 %v662_v17, %v2041_v58  ;;  %v686_v24 = vmul.f32 %v658_v15, %v2033_v54  ;;  %v688_v25 = vmul.f32 %v658_v15, %v2037_v56  ;;  %v691_v26 = vmul.f32 %v662_v17, %v2048_v62 }
 0x1da   : > { %v669_v27 = vcombine.low %v665_v19, %v666_v20  ;;  %v693_v32 = vmul.f32 %v662_v17, %v2054_v2  ;;  %v690_v33 = vmul.f32 %v658_v15, %v2045_v60  ;;  %v692_v18 = vmul.f32 %v658_v15, %v2051_v0  ;;  %v541_v2 = vld [vmem:[%s540_s14] ss:$2 sm:$0x3] }
 0x1db   : > { %v695_v55 = vmul.f32 %v662_v17, %v2060_v6  ;;  %v697_v58 = vmul.f32 %v662_v17, %v2066_v10  ;;  %v694_v54 = vmul.f32 %v658_v15, %v2057_v4  ;;  %v696_v56 = vmul.f32 %v658_v15, %v2063_v8  ;;  %v745_v20 = vld [vmem:[#allocation2] sm:$0xff] }
 0x1dc   : > { %v676_v62 = vrot.slane %v669_v27, %v643_v61  ;;  %v699_v28 = vmul.f32 %v662_v17, %v2072_v14  ;;  %v698_v29 = vmul.f32 %v658_v15, %v2069_v12  ;;  %v700_v30 = vmul.f32 %v658_v15, %v2075_v16 }
 0x1de   : > { %v683_v31 = vrot.slane %v676_v62, %v643_v61  ;;  %v751_v62 = vld [vmem:[#allocation2 + $0x30] sm:$0xff] }
 0x1e0   : > { %v685_v60 = vsub.f32 %v541_v2, %v683_v31 }
 0x1e2   : > { %v706_v34 = vrot.slane %v685_v60, %v657_v9  ;;  %v710_v0 = vrot.slane %v685_v60, %v661_v11 }
 0x1e4   : > { %v728_v35 = vadd.f32 %v710_v0, %v701_v21  ;;  %v714_v6 = vadd.f32 %v710_v0, %v687_v22  ;;  %v716_v36 = vadd.f32 %v710_v0, %v689_v23  ;;  %v713_v10 = vadd.f32 %v706_v34, %v686_v24  ;;  %v746_v21 = vld [vmem:[#allocation2 + $0x8] sm:$0xff]  ;;  %v747_v23 = vld [vmem:[#allocation2 + $0x10] sm:$0xff] }
 0x1e5   : > { %v715_v37 = vadd.f32 %v706_v34, %v688_v25  ;;  %v718_v4 = vadd.f32 %v710_v0, %v691_v26  ;;  %v720_v38 = vadd.f32 %v710_v0, %v693_v32  ;;  %v717_v8 = vadd.f32 %v706_v34, %v690_v33  ;;  %v748_v26 = vld [vmem:[#allocation2 + $0x18] sm:$0xff] }
 0x1e6   : > { %v744_v39 = vmax.f32 %v728_v35, 0.0  ;;  %v730_v40 = vmax.f32 %v714_v6, 0.0  ;;  %v732_v14 = vmax.f32 %v716_v36, 0.0  ;;  %v729_v42 = vmax.f32 %v713_v10, 0.0  ;;  %v753_v35 = vld [vmem:[#allocation2 + $0x40] sm:$0xff]  ;;  %v754_v6 = vld [vmem:[#allocation2 + $0x48] sm:$0xff] }
 0x1e7   : > { %v731_v12 = vmax.f32 %v715_v37, 0.0  ;;  %v734_v41 = vmax.f32 %v718_v4, 0.0  ;;  %v736_v16 = vmax.f32 %v720_v38, 0.0  ;;  %v719_v43 = vadd.f32 %v706_v34, %v692_v18  ;;  %v755_v10 = vld [vmem:[#allocation2 + $0x50] sm:$0xff]  ;;  %v756_v38 = vld [vmem:[#allocation2 + $0x58] sm:$0xff] }
 0x1e8   : > { %v762_v44 = vpack.c.bf16 %v732_v14, %v730_v40  ;;  %v733_v45 = vmax.f32 %v717_v8, 0.0  ;;  %v722_v46 = vadd.f32 %v710_v0, %v695_v55  ;;  %v724_v47 = vadd.f32 %v710_v0, %v697_v58  ;;  %v749_v58 = vld [vmem:[#allocation2 + $0x20] sm:$0xff] }
 0x1e9   : > { %v761_v48 = vpack.c.bf16 %v731_v12, %v729_v42  ;;  %v764_v49 = vpack.c.bf16 %v736_v16, %v734_v41  ;;  %v735_v50 = vmax.f32 %v719_v43, 0.0  ;;  %v721_v51 = vadd.f32 %v706_v34, %v694_v54  ;;  %v750_v54 = vld [vmem:[#allocation2 + $0x28] sm:$0xff]  ;;  %v757_v12 = vld [vmem:[#allocation2 + $0x60] sm:$0xff]  ;;  %v759_v43 = vld [vmem:[#allocation2 + $0x70] sm:$0xff] }
 0x1ea   : > { %993 = vmatprep.mubr.bf16.mxu1 %v762_v44  ;;  %v738_v52 = vmax.f32 %v722_v46, 0.0  ;;  %v740_v53 = vmax.f32 %v724_v47, 0.0  ;;  %v723_v57 = vadd.f32 %v706_v34, %v696_v56  ;;  %v726_v59 = vadd.f32 %v710_v0, %v699_v28  ;;  %v758_v41 = vld [vmem:[#allocation2 + $0x68] sm:$0xff]  ;;  %v760_v46 = vld [vmem:[#allocation2 + $0x78] sm:$0xff] }
 0x1eb   : > { %994 = vmatmul.mubr.bf16.vlgmr.msra.gmra.mrb[0].mxu1 %v761_v48  ;;  %v763_v61 = vpack.c.bf16 %v735_v50, %v733_v45  ;;  %v737_v63 = vmax.f32 %v721_v51, 0.0  ;;  %v725_v1 = vadd.f32 %v706_v34, %v698_v29  ;;  %v727_v3 = vadd.f32 %v706_v34, %v700_v30  ;;  %v752_v30 = vld [vmem:[#allocation2 + $0x38] sm:$0xff] }
 0x1ec   : > { %1003 = vmatprep.mubr.bf16.mxu1 %v764_v49  ;;  %v766_v5 = vpack.c.bf16 %v740_v53, %v738_v52  ;;  %v739_v7 = vmax.f32 %v723_v57, 0.0  ;;  %v742_v9 = vmax.f32 %v726_v59, 0.0 }
 0x1ed   : > { %v741_v11 = vmax.f32 %v725_v1, 0.0  ;;  %v743_v13 = vmax.f32 %v727_v3, 0.0 }
 0x1ee   : > { %v765_v15 = vpack.c.bf16 %v739_v7, %v737_v63  ;;  %v768_v17 = vpack.c.bf16 %v744_v39, %v742_v9 }
 0x1ef   : > { %v767_v19 = vpack.c.bf16 %v743_v13, %v741_v11 }
 0x1f3   : > { %1004 = vmatmul.mubr.bf16.gmra.mrb[4].mxu1 %v763_v61 }
 0x1f4   : > { %1013 = vmatprep.mubr.bf16.mxu1 %v766_v5 }
 0x1fb   : > { %1014 = vmatmul.mubr.bf16.gmra.mrb[8].mxu1 %v765_v15 }
 0x1fc   : > { %1023 = vmatprep.mubr.bf16.mxu1 %v768_v17 }
 0x203   : > { %1024 = vmatmul.mubr.bf16.gmra.mrb[12].mxu1 %v767_v19 }
 0x2be   : > { %v995_v22 = vpop.f32.mrb[0].mxu1 }
 0x2bf   : > { %v1034_v24 = vadd.f32 %v995_v22, %v745_v20  ;;  %v997_v25 = vpop.f32.mrb[1].mxu1 }
 0x2c0   : > { %v1035_v27 = vadd.f32 %v997_v25, %v746_v21  ;;  %v999_v32 = vpop.f32.mrb[2].mxu1 }
 0x2c1   : > { %1050 = vst [vmem:[#allocation2] sm:$0xff] %v1034_v24  ;;  %v1036_v33 = vadd.f32 %v999_v32, %v747_v23  ;;  %v1001_v18 = vpop.f32.mrb[3].mxu1 }
 0x2c2   : > { %1051 = vst [vmem:[#allocation2 + $0x8] sm:$0xff] %v1035_v27  ;;  %v1037_v55 = vadd.f32 %v1001_v18, %v748_v26 }
 0x2c3   : > { %1052 = vst [vmem:[#allocation2 + $0x10] sm:$0xff] %v1036_v33 }
 0x2c4   : > { %1053 = vst [vmem:[#allocation2 + $0x18] sm:$0xff] %v1037_v55 }
 0x2c6   : > { %v1005_v56 = vpop.f32.mrb[4].mxu1 }
 0x2c7   : > { %v1038_v28 = vadd.f32 %v1005_v56, %v749_v58  ;;  %v1007_v29 = vpop.f32.mrb[5].mxu1 }
 0x2c8   : > { %v1039_v2 = vadd.f32 %v1007_v29, %v750_v54  ;;  %v1009_v31 = vpop.f32.mrb[6].mxu1  ;;  %v1070_v52 = vld [vmem:[#allocation2] sm:$0xff] (!%p1394_p0) }
 0x2c9   : > { %1054 = vst [vmem:[#allocation2 + $0x20] sm:$0xff] %v1038_v28  ;;  %v1040_v60 = vadd.f32 %v1009_v31, %v751_v62  ;;  %v1011_v34 = vpop.f32.mrb[7].mxu1  ;;  %v1071_v63 = vld [vmem:[#allocation2 + $0x8] sm:$0xff] (!%p1394_p0) }
 0x2ca   : > { %1055 = vst [vmem:[#allocation2 + $0x28] sm:$0xff] %v1039_v2  ;;  %v1041_v0 = vadd.f32 %v1011_v34, %v752_v30  ;;  %v1072_v53 = vld [vmem:[#allocation2 + $0x10] sm:$0xff] (!%p1394_p0) }
 0x2cb   : > { %1056 = vst [vmem:[#allocation2 + $0x30] sm:$0xff] %v1040_v60  ;;  %v1086_v59 = vadd.f32 (!%p1394_p0), %v1072_v53, %v1070_v52  ;;  %v1073_v3 = vld [vmem:[#allocation2 + $0x18] sm:$0xff] (!%p1394_p0) }
 0x2cc   : > { %1057 = vst [vmem:[#allocation2 + $0x38] sm:$0xff] %v1041_v0  ;;  %v1099_v9 = vadd.f32 (!%p1394_p0), %v1073_v3, %v1071_v63 }
 0x2ce   : > { %v1015_v36 = vpop.f32.mrb[8].mxu1 }
 0x2cf   : > { %v1042_v37 = vadd.f32 %v1015_v36, %v753_v35  ;;  %v1017_v4 = vpop.f32.mrb[9].mxu1 }
 0x2d0   : > { %v1043_v8 = vadd.f32 %v1017_v4, %v754_v6  ;;  %v1019_v39 = vpop.f32.mrb[10].mxu1  ;;  %v1074_v57 = vld [vmem:[#allocation2 + $0x20] sm:$0xff] (!%p1394_p0) }
 0x2d1   : > { %1058 = vst [vmem:[#allocation2 + $0x40] sm:$0xff] %v1042_v37  ;;  %v1044_v40 = vadd.f32 %v1019_v39, %v755_v10  ;;  %v1021_v14 = vpop.f32.mrb[11].mxu1  ;;  %v1087_v1 = vadd.f32 (!%p1394_p0), %v1086_v59, %v1074_v57  ;;  %v1075_v5 = vld [vmem:[#allocation2 + $0x28] sm:$0xff] (!%p1394_p0) }
 0x2d2   : > { %1059 = vst [vmem:[#allocation2 + $0x48] sm:$0xff] %v1043_v8  ;;  %v1045_v42 = vadd.f32 %v1021_v14, %v756_v38  ;;  %v1076_v61 = vld [vmem:[#allocation2 + $0x30] sm:$0xff] (!%p1394_p0)  ;;  %v1100_v17 = vadd.f32 (!%p1394_p0), %v1099_v9, %v1075_v5 }
 0x2d3   : > { %1060 = vst [vmem:[#allocation2 + $0x50] sm:$0xff] %v1044_v40  ;;  %v1088_v11 = vadd.f32 (!%p1394_p0), %v1087_v1, %v1076_v61  ;;  %v1077_v13 = vld [vmem:[#allocation2 + $0x38] sm:$0xff] (!%p1394_p0) }
 0x2d4   : > { %1061 = vst [vmem:[#allocation2 + $0x58] sm:$0xff] %v1045_v42  ;;  %v1101_v22 = vadd.f32 (!%p1394_p0), %v1100_v17, %v1077_v13 }
 0x2d6   : > { %v1025_v16 = vpop.f32.mrb[12].mxu1  ;;  %1069 = sbr.rel (%p1394_p0) target bundleno = 810 (0x32a), region = 60 }
 0x2d7   : > { %v1046_v44 = vadd.f32 %v1025_v16, %v757_v12  ;;  %v1027_v45 = vpop.f32.mrb[13].mxu1 }
 0x2d8   : > { %v1047_v47 = vadd.f32 %v1027_v45, %v758_v41  ;;  %v1029_v48 = vpop.f32.mrb[14].mxu1  ;;  %v1078_v7 = vld [vmem:[#allocation2 + $0x40] sm:$0xff] (!%p1394_p0) }
 0x2d9   : > { %1062 = vst [vmem:[#allocation2 + $0x60] sm:$0xff] %v1046_v44  ;;  %v1048_v49 = vadd.f32 %v1029_v48, %v759_v43  ;;  %v1031_v50 = vpop.f32.mrb[15].mxu1  ;;  %v1089_v19 = vadd.f32 (!%p1394_p0), %v1088_v11, %v1078_v7  ;;  %v1079_v20 = vld [vmem:[#allocation2 + $0x48] sm:$0xff] (!%p1394_p0) }
 0x2da   : > { %1063 = vst [vmem:[#allocation2 + $0x68] sm:$0xff] %v1047_v47  ;;  %v1049_v51 = vadd.f32 %v1031_v50, %v760_v46  ;;  %v1080_v15 = vld [vmem:[#allocation2 + $0x50] sm:$0xff] (!%p1394_p0)  ;;  %v1102_v26 = vadd.f32 (!%p1394_p0), %v1101_v22, %v1079_v20 }
 0x2db   : > { %1064 = vst [vmem:[#allocation2 + $0x70] sm:$0xff] %v1048_v49  ;;  %v1090_v23 = vadd.f32 (!%p1394_p0), %v1089_v19, %v1080_v15  ;;  %v1081_v24 = vld [vmem:[#allocation2 + $0x58] sm:$0xff] (!%p1394_p0) }
 0x2dc   : > { %1065 = vst [vmem:[#allocation2 + $0x78] sm:$0xff] %v1049_v51  ;;  %v1103_v33 = vadd.f32 (!%p1394_p0), %v1102_v26, %v1081_v24 }
 0x2e0   : > { %v1082_v21 = vld [vmem:[#allocation2 + $0x60] sm:$0xff] }
 0x2e1   : > { %v1091_v27 = vadd.f32 %v1090_v23, %v1082_v21  ;;  %v1083_v32 = vld [vmem:[#allocation2 + $0x68] sm:$0xff] }
 0x2e2   : > { %v1084_v25 = vld [vmem:[#allocation2 + $0x70] sm:$0xff]  ;;  %v1104_v58 = vadd.f32 %v1103_v33, %v1083_v32 }
 0x2e3   : > { %v1092_v18 = vadd.f32 %v1091_v27, %v1084_v25  ;;  %v1085_v55 = vld [vmem:[#allocation2 + $0x78] sm:$0xff] }
 0x2e4   : > { %v1105_v56 = vadd.f32 %v1104_v58, %v1085_v55 }
 0x2e5   : > { %v1093_v54 = vrot.slane %v1092_v18, 4 }
 0x2e6   : > { %v1106_v28 = vrot.slane %v1105_v56, 4 }
 0x2e7   : > { %v1094_v62 = vadd.f32 %v1093_v54, %v1092_v18 }
 0x2e8   : > { %v1107_v30 = vadd.f32 %v1106_v28, %v1105_v56 }
 0x2e9   : > { %v1095_v29 = vrot.slane %v1094_v62, 2 }
 0x2ea   : > { %v1108_v31 = vrot.slane %v1107_v30, 2 }
 0x2eb   : > { %v1096_v2 = vadd.f32 %v1095_v29, %v1094_v62 }
 0x2ec   : > { %v1109_v34 = vadd.f32 %v1108_v31, %v1107_v30 }
 0x2ed   : > { %v1097_v60 = vrot.slane %v1096_v2, 1 }
 0x2ee   : > { %v1110_v35 = vrot.slane %v1109_v34, 1 }
 0x2ef   : > { %v1098_v0 = vadd.f32 %v1097_v60, %v1096_v2 }
 0x2f0   : > { %v1111_v36 = vadd.f32 %v1110_v35, %v1109_v34 }
 0x2f1   : > { %v1112_v6 = vmul.f32 0.015625, %v1098_v0 }
 0x2f2   : > { %v1113_v16 = vmul.f32 0.015625, %v1111_v36 }
 0x2f3   : > { %v2148_v10 = vsub.f32 %v1070_v52, %v1112_v6  ;;  %v2150_v37 = vsub.f32 %v1072_v53, %v1112_v6  ;;  %v2152_v4 = vsub.f32 %v1074_v57, %v1112_v6  ;;  %v2154_v38 = vsub.f32 %v1076_v61, %v1112_v6 }
 0x2f4   : > { %v2156_v8 = vsub.f32 %v1078_v7, %v1112_v6  ;;  %v2164_v42 = vsub.f32 %v1080_v15, %v1112_v6  ;;  %v1126_v43 = vsub.f32 %v1082_v21, %v1112_v6  ;;  %v2170_v46 = vsub.f32 %v1071_v63, %v1113_v16 }
 0x2f5   : > { %v1130_v39 = vmul.f32 %v2148_v10, %v2148_v10  ;;  %v1132_v40 = vmul.f32 %v2150_v37, %v2150_v37  ;;  %v1134_v14 = vmul.f32 %v2152_v4, %v2152_v4  ;;  %v1136_v12 = vmul.f32 %v2154_v38, %v2154_v38 }
 0x2f6   : > { %v1138_v44 = vmul.f32 %v2156_v8, %v2156_v8  ;;  %v2172_v47 = vsub.f32 %v1073_v3, %v1113_v16  ;;  %v2174_v48 = vsub.f32 %v1075_v5, %v1113_v16  ;;  %v1128_v49 = vsub.f32 %v1084_v25, %v1112_v6 }
 0x2f7   : > { %v1146_v41 = vadd.f32 %v1132_v40, %v1130_v39  ;;  %v1140_v50 = vmul.f32 %v2164_v42, %v2164_v42  ;;  %v2178_v51 = vsub.f32 %v1077_v13, %v1113_v16  ;;  %v2180_v53 = vsub.f32 %v1079_v20, %v1113_v16 }
 0x2f8   : > { %v1131_v57 = vmul.f32 %v2170_v46, %v2170_v46  ;;  %v1133_v59 = vmul.f32 %v2172_v47, %v2172_v47  ;;  %v1142_v61 = vmul.f32 %v1126_v43, %v1126_v43  ;;  %v1135_v63 = vmul.f32 %v2174_v48, %v2174_v48 }
 0x2f9   : > { %v1147_v45 = vadd.f32 %v1146_v41, %v1134_v14  ;;  %v1125_v3 = vsub.f32 %v1081_v24, %v1113_v16  ;;  %v1137_v5 = vmul.f32 %v2178_v51, %v2178_v51  ;;  %v1144_v9 = vmul.f32 %v1128_v49, %v1128_v49 }
 0x2fa   : > { %v1159_v7 = vadd.f32 %v1133_v59, %v1131_v57  ;;  %v1127_v13 = vsub.f32 %v1083_v32, %v1113_v16  ;;  %v1139_v15 = vmul.f32 %v2180_v53, %v2180_v53  ;;  %v1129_v20 = vsub.f32 %v1085_v55, %v1113_v16 }
 0x2fb   : > { %v1148_v52 = vadd.f32 %v1147_v45, %v1136_v12  ;;  %v1141_v21 = vmul.f32 %v1125_v3, %v1125_v3 }
 0x2fc   : > { %v1160_v17 = vadd.f32 %v1159_v7, %v1135_v63  ;;  %v1143_v25 = vmul.f32 %v1127_v13, %v1127_v13  ;;  %v1145_v24 = vmul.f32 %v1129_v20, %v1129_v20 }
 0x2fd   : > { %v1149_v1 = vadd.f32 %v1148_v52, %v1138_v44 }
 0x2fe   : > { %v1161_v22 = vadd.f32 %v1160_v17, %v1137_v5 }
 0x2ff   : > { %v1150_v11 = vadd.f32 %v1149_v1, %v1140_v50 }
 0x300   : > { %v1162_v26 = vadd.f32 %v1161_v22, %v1139_v15 }
 0x301   : > { %v1151_v19 = vadd.f32 %v1150_v11, %v1142_v61 }
 0x302   : > { %v1163_v33 = vadd.f32 %v1162_v26, %v1141_v21 }
 0x303   : > { %v1152_v23 = vadd.f32 %v1151_v19, %v1144_v9 }
 0x304   : > { %v1164_v58 = vadd.f32 %v1163_v33, %v1143_v25 }
 0x305   : > { %v1153_v27 = vrot.slane %v1152_v23, 4 }
 0x306   : > { %v1165_v56 = vadd.f32 %v1164_v58, %v1145_v24 }
 0x307   : > { %v1154_v18 = vadd.f32 %v1153_v27, %v1152_v23 }
 0x308   : > { %v1166_v32 = vrot.slane %v1165_v56, 4 }
 0x309   : > { %v1155_v54 = vrot.slane %v1154_v18, 2 }
 0x30a   : > { %v1167_v29 = vadd.f32 %v1166_v32, %v1165_v56 }
 0x30b   : > { %v1156_v62 = vadd.f32 %v1155_v54, %v1154_v18 }
 0x30c   : > { %v1168_v2 = vrot.slane %v1167_v29, 2 }
 0x30d   : > { %v1157_v28 = vrot.slane %v1156_v62, 1 }
 0x30e   : > { %v1169_v55 = vadd.f32 %v1168_v2, %v1167_v29 }
 0x30f   : > { %v1158_v30 = vadd.f32 %v1157_v28, %v1156_v62 }
 0x310   : > { %v1170_v34 = vrot.slane %v1169_v55, 1 }
 0x311   : > { %v1172_v31 = vmul.f32 0.015625, %v1158_v30 }
 0x312   : > { %v1171_v0 = vadd.f32 %v1170_v34, %v1169_v55 }
 0x313   : > { %v1174_v60 = vadd.f32 1e-05, %v1172_v31 }
 0x314   : > { %v1173_v35 = vmul.f32 0.015625, %v1171_v0 }
 0x315   : > { %1571 = vrsqrt.f32 %v1174_v60 }
 0x316   : > { %v1175_v6 = vadd.f32 1e-05, %v1173_v35 }
 0x318   : > { %1573 = vrsqrt.f32 %v1175_v6 }
 0x31f   : > { %v1572_v36 = vpop.eup %1571 }
 0x320   : > { %v1178_v39 = vmul.f32 %v1572_v36, %v2148_v10  ;;  %v1180_v40 = vmul.f32 %v1572_v36, %v2150_v37  ;;  %v1182_v14 = vmul.f32 %v1572_v36, %v2152_v4  ;;  %v1184_v12 = vmul.f32 %v1572_v36, %v2154_v38 }
 0x321   : > { %v1186_v41 = vmul.f32 %v1572_v36, %v2156_v8  ;;  %v1188_v16 = vmul.f32 %v1572_v36, %v2164_v42  ;;  %v1190_v44 = vmul.f32 %v1572_v36, %v1126_v43  ;;  %v1192_v45 = vmul.f32 %v1572_v36, %v1128_v49 }
 0x322   : > { %1194 = vst [vmem:[#allocation9] sm:$0xff] %v1178_v39  ;;  %1196 = vst [vmem:[#allocation9 + $0x10] sm:$0xff] %v1180_v40  ;;  %v1574_v10 = vpop.eup %1573 }
 0x323   : > { %1198 = vst [vmem:[#allocation9 + $0x20] sm:$0xff] %v1182_v14  ;;  %1200 = vst [vmem:[#allocation9 + $0x30] sm:$0xff] %v1184_v12  ;;  %v1179_v37 = vmul.f32 %v1574_v10, %v2170_v46  ;;  %v1181_v4 = vmul.f32 %v1574_v10, %v2172_v47  ;;  %v1183_v38 = vmul.f32 %v1574_v10, %v2174_v48 }
 0x324   : > { %1202 = vst [vmem:[#allocation9 + $0x40] sm:$0xff] %v1186_v41  ;;  %1204 = vst [vmem:[#allocation9 + $0x50] sm:$0xff] %v1188_v16  ;;  %v1185_v8 = vmul.f32 %v1574_v10, %v2178_v51  ;;  %v1187_v42 = vmul.f32 %v1574_v10, %v2180_v53  ;;  %v1189_v43 = vmul.f32 %v1574_v10, %v1125_v3 }
 0x325   : > { %1206 = vst [vmem:[#allocation9 + $0x60] sm:$0xff] %v1190_v44  ;;  %1208 = vst [vmem:[#allocation9 + $0x70] sm:$0xff] %v1192_v45  ;;  %v1191_v49 = vmul.f32 %v1574_v10, %v1127_v13  ;;  %v1193_v50 = vmul.f32 %v1574_v10, %v1129_v20 }
 0x326   : > { %1195 = vst [vmem:[#allocation9 + $0x8] sm:$0xff] %v1179_v37  ;;  %1197 = vst [vmem:[#allocation9 + $0x18] sm:$0xff] %v1181_v4 }
 0x327   : > { %1199 = vst [vmem:[#allocation9 + $0x28] sm:$0xff] %v1183_v38  ;;  %1201 = vst [vmem:[#allocation9 + $0x38] sm:$0xff] %v1185_v8 }
 0x328   : > { %1203 = vst [vmem:[#allocation9 + $0x48] sm:$0xff] %v1187_v42  ;;  %1205 = vst [vmem:[#allocation9 + $0x58] sm:$0xff] %v1189_v43 }
 0x329   : > { %1207 = vst [vmem:[#allocation9 + $0x68] sm:$0xff] %v1191_v49  ;;  %1209 = vst [vmem:[#allocation9 + $0x78] sm:$0xff] %v1193_v50 }
 0x32a PF: > { %p1429_p5 = scmp.eq.s32.totalorder %s1883_s15, 1  ;;  %s1760_s21 = smov [#allocation9]  }
 0x32b   : > { %s1219_s25 = sshll.u32 %s1760_s21, 4  ;;  %s1220_s25 = int_to_ptr.vmem [resolvable:$true] %s1219_s25 }
 0x32c   : > { %s1663_s10 = scalar_lea.vmem %s1220_s25, 2048  ;;  %p1670_p8 = scmp.lt.s32.totalorder %s1220_s25, %s1220_s25 }
 0x32d   : > { %p1664_p1 = scmp.ne.s32.totalorder %s1220_s25, %s1663_s10  ;;  %p1671_p13 = scmp.lt.s32.totalorder %s1663_s10, %s1663_s10 }
 0x32f   : > { %p1665_p4 = pnand %p1664_p1, %p1429_p5  ;;  %p1672_p2 = por %p1671_p13, %p1670_p8 }
 0x331   : > { %p1666_p7 = pneg %p1665_p4 }
 0x333   : > { %p1673_p3 = pnand %p1672_p2, %p1666_p7 }
 0x335   : > { %1676 = shalt.err (!%p1673_p3)
}
 0x336   : > { %s1677_s28 = scalar_lea.hbm %s2249_s5, 2048 }
 0x337   : > { %p1678_p6 = scmp.ne.s32.totalorder %s2249_s5, %s1677_s28  ;;  %p1683_p10 = scmp.lt.u32.totalorder %s1677_s28, %s2249_s5 }
 0x339   : > { %p1679_p11 = pnand %p1678_p6, %p1429_p5 }
 0x33b   : > { %p1680_p12 = pneg %p1679_p11 }
 0x33d   : > { %p1685_p9 = pnand %p1683_p10, %p1680_p12 }
 0x33f   : > { %1688 = shalt.err (!%p1685_p9)
}
 0x340   : > { %s1761_s6 = smov 256   ;;  %s1762_s8 = smov 16  }
 0x341   : > { %1412 = dma.vmem_to_hbm [thread:$0]  (%p1429_p5), %s1220_s25, 2048, %s2249_s5, [#allocation5], %s1761_s6, %s1761_s6, %s1762_s8  }
 0x342   : > { %1722 = dma.done.wait (%p1429_p5), [#allocation5], 2048  }
 0x343   : > { %1724 = vsyncadd (%p1429_p5), [#allocation5], 4294965248 }
 0x344 PF: > { %s20_s23 = sadd.s32 1, %s1747_s23   ;;  %s2273_s18 = smov %s1731_s19 }
 0x345   : > { %p17_p0 = scmp.ge.s32.totalorder %s20_s23, 4   ;;  %s2274_s19 = smov %s1735_s20 }
 0x346   : > { %s2275_s20 = smov %s1837_s30  ;;  %s2276_s21 = smov %s1743_s22 }
 0x347   : > { %s2277_s22 = smov %s2279_s24  ;;  %19 = sbr.rel (!%p17_p0) target bundleno = 8 (0x8), region = 104 }
 0x34e   :  { %1235 = vsyncpa [#allocation4], 1 }
 0x34f   :  { %1237 = vsyncpa [#allocation4 + $0x1], 1 }
 0x350   :  { %1238 = vsyncpa [#allocation7], 1 }
 0x351   :  { %1240 = vsyncpa [#allocation7 + $0x1], 1 }
 0x352   :  { %1241 = vsyncpa [#allocation5], 1 }
 0x353   :  { %1243 = vsyncpa [#allocation5 + $0x1], 1 }

</bundles_post_ra>
